<compile_context>
chip_gen: v7x
topology: tpu7x:2x2x1
jax: 0.10.0
libtpu: 0.0.40
codegen_flags: <defaults>
</compile_context>

<pallas_src>
import functools

import jax
import jax.numpy as jnp
from jax import lax
from jax.experimental import pallas as pl
from jax.experimental.pallas import tpu as pltpu


def _round_up(x, m):
    return ((x + m - 1) // m) * m


# ------------------------- hoisted input projection ---------------------------
def _input_proj_kernel(x_ref, w_ref, b_ref, out_ref):
    out_ref[...] = (
        jnp.dot(x_ref[...], w_ref[...], preferred_element_type=jnp.float32)
        + b_ref[...]
    ).astype(out_ref.dtype)


def input_projection(x_2d, w_t, b):
    """gates_x = x_2d @ w_t + b.  x_2d: (R, In), w_t: (In, 4H), b: (1, 4H)."""
    R, In = x_2d.shape
    G = w_t.shape[1]
    return pl.pallas_call(
        _input_proj_kernel,
        out_shape=jax.ShapeDtypeStruct((R, G), jnp.float32),
        in_specs=[
            pl.BlockSpec((R, In), lambda: (0, 0)),
            pl.BlockSpec((In, G), lambda: (0, 0)),
            pl.BlockSpec((1, G), lambda: (0, 0)),
        ],
        out_specs=pl.BlockSpec((R, G), lambda: (0, 0)),
        grid=(),
    )(x_2d, w_t, b)


# ------------------ recurrence kernel (intermediate layers) -------------------
def _lstm_recurrence_kernel(gx_ref, whh_ref, h0_ref, c0_ref, hseq_ref, *,
                            hidden_size, seq_len):
    H = hidden_size

    def step(t, carry):
        h, c = carry
        gates = gx_ref[t] + jnp.dot(h, whh_ref[...],
                                    preferred_element_type=jnp.float32)
        i_g = jax.nn.sigmoid(gates[:, 0 * H:1 * H])
        f_g = jax.nn.sigmoid(gates[:, 1 * H:2 * H])
        g_g = jnp.tanh(gates[:, 2 * H:3 * H])
        o_g = jax.nn.sigmoid(gates[:, 3 * H:4 * H])
        c = f_g * c + i_g * g_g
        h = o_g * jnp.tanh(c)
        hseq_ref[t] = h.astype(hseq_ref.dtype)
        return h, c

    h0 = h0_ref[...].astype(jnp.float32)
    c0 = c0_ref[...].astype(jnp.float32)
    lax.fori_loop(0, seq_len, step, (h0, c0), unroll=True)


def lstm_recurrence(gx, whh_t, h0, c0, *, b_tile):
    """gx: (T, Bp, 4H) precomputed x-gates.  Returns h_seq (T, Bp, H)."""
    T, Bp, G = gx.shape
    H = whh_t.shape[0]
    nb = Bp // b_tile
    kernel = functools.partial(_lstm_recurrence_kernel,
                               hidden_size=H, seq_len=T)
    return pl.pallas_call(
        kernel,
        out_shape=jax.ShapeDtypeStruct((T, Bp, H), jnp.float32),
        grid=(nb,),
        in_specs=[
            pl.BlockSpec((T, b_tile, G), lambda b: (0, b, 0)),   # precomputed gates_x
            pl.BlockSpec((H, G), lambda b: (0, 0)),              # W_hh^T (resident)
            pl.BlockSpec((b_tile, H), lambda b: (b, 0)),         # h0
            pl.BlockSpec((b_tile, H), lambda b: (b, 0)),         # c0
        ],
        out_specs=pl.BlockSpec((T, b_tile, H), lambda b: (0, b, 0)),
        compiler_params=pltpu.CompilerParams(
            dimension_semantics=("parallel",)),                  # batch tiles independent
    )(gx, whh_t, h0, c0)


# ------------- final layer: recurrence + FC + sigmoid, fused ------------------
def _lstm_final_fused_kernel(gx_ref, whh_ref, h0_ref, c0_ref, wfc_ref, bfc_ref,
                             pred_ref, *, hidden_size, seq_len):
    H = hidden_size

    def step(t, carry):
        h, c = carry
        gates = gx_ref[t] + jnp.dot(h, whh_ref[...],
                                    preferred_element_type=jnp.float32)
        i_g = jax.nn.sigmoid(gates[:, 0 * H:1 * H])
        f_g = jax.nn.sigmoid(gates[:, 1 * H:2 * H])
        g_g = jnp.tanh(gates[:, 2 * H:3 * H])
        o_g = jax.nn.sigmoid(gates[:, 3 * H:4 * H])
        c = f_g * c + i_g * g_g
        h = o_g * jnp.tanh(c)
        return h, c

    h0 = h0_ref[...].astype(jnp.float32)
    c0 = c0_ref[...].astype(jnp.float32)
    h_last, _ = lax.fori_loop(0, seq_len, step, (h0, c0), unroll=True)

    logits = jnp.dot(h_last, wfc_ref[...],
                     preferred_element_type=jnp.float32) + bfc_ref[...]
    pred_ref[...] = jax.nn.sigmoid(logits).astype(pred_ref.dtype)


def lstm_final_fused(gx, whh_t, h0, c0, wfc_t, bfc, *, b_tile):
    """Last LSTM layer + Linear + Sigmoid.  Returns pred (Bp, O) only."""
    T, Bp, G = gx.shape
    H = whh_t.shape[0]
    O = wfc_t.shape[1]
    nb = Bp // b_tile
    kernel = functools.partial(_lstm_final_fused_kernel,
                               hidden_size=H, seq_len=T)
    return pl.pallas_call(
        kernel,
        out_shape=jax.ShapeDtypeStruct((Bp, O), jnp.float32),
        grid=(nb,),
        in_specs=[
            pl.BlockSpec((T, b_tile, G), lambda b: (0, b, 0)),   # precomputed gates_x
            pl.BlockSpec((H, G), lambda b: (0, 0)),              # W_hh^T
            pl.BlockSpec((b_tile, H), lambda b: (b, 0)),         # h0
            pl.BlockSpec((b_tile, H), lambda b: (b, 0)),         # c0
            pl.BlockSpec((H, O), lambda b: (0, 0)),              # FC weight^T
            pl.BlockSpec((1, O), lambda b: (0, 0)),              # FC bias
        ],
        out_specs=pl.BlockSpec((b_tile, O), lambda b: (b, 0)),
        compiler_params=pltpu.CompilerParams(
            dimension_semantics=("parallel",)),
    )(gx, whh_t, h0, c0, wfc_t, bfc)


# --------------------------------- parameters ---------------------------------
def init_params(key, input_size, hidden_size, num_layers, output_size):
    """PyTorch-shaped parameters, U(-k, k) with k = 1/sqrt(H)."""
    params = {"layers": []}
    k = 1.0 / float(hidden_size) ** 0.5
    for l in range(num_layers):
        in_sz = input_size if l == 0 else hidden_size
        key, k1, k2, k3, k4 = jax.random.split(key, 5)
        params["layers"].append({
            "w_ih": jax.random.uniform(k1, (4 * hidden_size, in_sz), jnp.float32, -k, k),
            "w_hh": jax.random.uniform(k2, (4 * hidden_size, hidden_size), jnp.float32, -k, k),
            "b_ih": jax.random.uniform(k3, (4 * hidden_size,), jnp.float32, -k, k),
            "b_hh": jax.random.uniform(k4, (4 * hidden_size,), jnp.float32, -k, k),
        })
    key, k5, k6 = jax.random.split(key, 3)
    params["fc_w"] = jax.random.uniform(k5, (output_size, hidden_size), jnp.float32, -k, k)
    params["fc_b"] = jax.random.uniform(k6, (output_size,), jnp.float32, -k, k)
    return params


def prepare_params(params):
    """Pre-transpose weights ONCE (outside the jitted forward)."""
    prepped = {"layers": []}
    for lp in params["layers"]:
        prepped["layers"].append({
            "w_ih_t": jnp.transpose(lp["w_ih"]),                 # (in, 4H)
            "w_hh_t": jnp.transpose(lp["w_hh"]),                 # (H, 4H)
            "bias": (lp["b_ih"] + lp["b_hh"]).reshape(1, -1),    # (1, 4H)
        })
    prepped["fc_w_t"] = jnp.transpose(params["fc_w"])            # (H, O)
    prepped["fc_b"] = params["fc_b"].reshape(1, -1)              # (1, O)
    return prepped


# --------------------------------- full model ---------------------------------
@jax.jit
def lstm_model_forward(prepped, x, h0, c0):
    """x: (B, T, I) batch_first.  h0/c0: (num_layers, B, H).  Returns (B, O)."""
    B, T, _ = x.shape
    L = len(prepped["layers"])
    H = prepped["layers"][0]["w_hh_t"].shape[0]

    # Pad batch to f32 sublane multiple; pick the batch tile for the parallel grid.
    B_pad = _round_up(B, 8) if B <= 128 else _round_up(B, 128)
    b_tile = min(B_pad, 128)
    pad = B_pad - B

    x_p = jnp.pad(x, ((0, pad), (0, 0), (0, 0)))
    h0_p = jnp.pad(h0, ((0, 0), (0, pad), (0, 0)))
    c0_p = jnp.pad(c0, ((0, 0), (0, pad), (0, 0)))

    seq = jnp.transpose(x_p, (1, 0, 2))                          # (T, B_pad, in) time-major
    pred_p = None
    for l, lp in enumerate(prepped["layers"]):
        in_sz = seq.shape[-1]
        # Hoisted input projection: one big MXU matmul for all T timesteps.
        gx = input_projection(seq.reshape(T * B_pad, in_sz), lp["w_ih_t"], lp["bias"])
        gx = gx.reshape(T, B_pad, 4 * H)
        if l < L - 1:
            seq = lstm_recurrence(gx, lp["w_hh_t"], h0_p[l], c0_p[l], b_tile=b_tile)
        else:
            pred_p = lstm_final_fused(gx, lp["w_hh_t"], h0_p[l], c0_p[l],
                                      prepped["fc_w_t"], prepped["fc_b"],
                                      b_tile=b_tile)
    return pred_p[:B]


if __name__ == "__main__":
    # Small shapes consistent with the module's forward.
    B, T = 2, 8
    input_size, hidden_size, num_layers, output_size = 16, 32, 2, 1

    key = jax.random.PRNGKey(0)
    key, kp, kx, kh, kc = jax.random.split(key, 5)

    params = init_params(kp, input_size, hidden_size, num_layers, output_size)
    prepped = prepare_params(params)

    x = jax.random.normal(kx, (B, T, input_size), jnp.float32)
    # PyTorch forward draws h0/c0 from randn each call; drawn deterministically here.
    h0 = jax.random.normal(kh, (num_layers, B, hidden_size), jnp.float32)
    c0 = jax.random.normal(kc, (num_layers, B, hidden_size), jnp.float32)

    pred = lstm_model_forward(prepped, x, h0, c0)
    jax.block_until_ready(pred)
    assert pred.shape == (B, output_size)
    assert bool(jnp.all((pred >= 0.0) & (pred <= 1.0)))
    print("KERNEL_OK")
</pallas_src>

<mosaic_0001>
module attributes {stable_mosaic.version = 11 : i64} {
  func.func @_input_proj_kernel(%arg0: memref<64x16xf32, #tpu.memory_space<vmem>>, %arg1: memref<16x128xf32, #tpu.memory_space<vmem>>, %arg2: memref<1x128xf32, #tpu.memory_space<vmem>>, %arg3: memref<64x128xf32, #tpu.memory_space<vmem>>) attributes {dimension_semantics = [], scalar_prefetch = 0 : i64, scratch_operands = 0 : i64, tpu.core_type = #tpu.core_type<tc>} {
    %c0 = arith.constant 0 : index
    %c0_0 = arith.constant 0 : index
    %0 = vector.load %arg0[%c0, %c0_0] : memref<64x16xf32, #tpu.memory_space<vmem>>, vector<64x16xf32>
    %c0_1 = arith.constant 0 : index
    %c0_2 = arith.constant 0 : index
    %1 = vector.load %arg1[%c0_1, %c0_2] : memref<16x128xf32, #tpu.memory_space<vmem>>, vector<16x128xf32>
    %cst = arith.constant dense<0.000000e+00> : vector<64x128xf32>
    %2 = tpu.matmul %0, %1, %cst {dimension_numbers = #tpu.dot_dimension_numbers<[1], [0], [0], [1], [0, 0, 1, 1], [], []>} : vector<64x16xf32>, vector<16x128xf32>, vector<64x128xf32> -> vector<64x128xf32>
    %c0_3 = arith.constant 0 : index
    %c0_4 = arith.constant 0 : index
    %3 = vector.load %arg2[%c0_3, %c0_4] : memref<1x128xf32, #tpu.memory_space<vmem>>, vector<1x128xf32>
    %4 = vector.broadcast %3 : vector<1x128xf32> to vector<64x128xf32>
    %5 = arith.addf %2, %4 : vector<64x128xf32>
    %c0_5 = arith.constant 0 : index
    %c0_6 = arith.constant 0 : index
    %6 = vector.load %arg3[%c0_5, %c0_6] : memref<64x128xf32, #tpu.memory_space<vmem>>, vector<64x128xf32>
    tpu.vector_store %arg3[%c0_5, %c0_6], %5 {strides = array<i32>} : memref<64x128xf32, #tpu.memory_space<vmem>>, vector<64x128xf32>,
    return
  }
}

module attributes {stable_mosaic.version = 11 : i64} {
  func.func @_input_proj_kernel(%arg0: memref<64x32xf32, #tpu.memory_space<vmem>>, %arg1: memref<32x128xf32, #tpu.memory_space<vmem>>, %arg2: memref<1x128xf32, #tpu.memory_space<vmem>>, %arg3: memref<64x128xf32, #tpu.memory_space<vmem>>) attributes {dimension_semantics = [], scalar_prefetch = 0 : i64, scratch_operands = 0 : i64, tpu.core_type = #tpu.core_type<tc>} {
    %c0 = arith.constant 0 : index
    %c0_0 = arith.constant 0 : index
    %0 = vector.load %arg0[%c0, %c0_0] : memref<64x32xf32, #tpu.memory_space<vmem>>, vector<64x32xf32>
    %c0_1 = arith.constant 0 : index
    %c0_2 = arith.constant 0 : index
    %1 = vector.load %arg1[%c0_1, %c0_2] : memref<32x128xf32, #tpu.memory_space<vmem>>, vector<32x128xf32>
    %cst = arith.constant dense<0.000000e+00> : vector<64x128xf32>
    %2 = tpu.matmul %0, %1, %cst {dimension_numbers = #tpu.dot_dimension_numbers<[1], [0], [0], [1], [0, 0, 1, 1], [], []>} : vector<64x32xf32>, vector<32x128xf32>, vector<64x128xf32> -> vector<64x128xf32>
    %c0_3 = arith.constant 0 : index
    %c0_4 = arith.constant 0 : index
    %3 = vector.load %arg2[%c0_3, %c0_4] : memref<1x128xf32, #tpu.memory_space<vmem>>, vector<1x128xf32>
    %4 = vector.broadcast %3 : vector<1x128xf32> to vector<64x128xf32>
    %5 = arith.addf %2, %4 : vector<64x128xf32>
    %c0_5 = arith.constant 0 : index
    %c0_6 = arith.constant 0 : index
    %6 = vector.load %arg3[%c0_5, %c0_6] : memref<64x128xf32, #tpu.memory_space<vmem>>, vector<64x128xf32>
    tpu.vector_store %arg3[%c0_5, %c0_6], %5 {strides = array<i32>} : memref<64x128xf32, #tpu.memory_space<vmem>>, vector<64x128xf32>,
    return
  }
}

module attributes {stable_mosaic.version = 11 : i64} {
  func.func @_lstm_recurrence_kernel(%arg0: i32, %arg1: memref<8x8x128xf32, #tpu.memory_space<vmem>>, %arg2: memref<32x128xf32, #tpu.memory_space<vmem>>, %arg3: memref<8x32xf32, #tpu.memory_space<vmem>>, %arg4: memref<8x32xf32, #tpu.memory_space<vmem>>, %arg5: memref<8x8x32xf32, #tpu.memory_space<vmem>>) attributes {dimension_semantics = [#tpu.dimension_semantics<parallel>], iteration_bounds = array<i64: 1>, scalar_prefetch = 0 : i64, scratch_operands = 0 : i64, tpu.core_type = #tpu.core_type<tc>, window_params = [{transform_indices = @transform_0, window_bounds = array<i64: 8, 8, 128>}, {pipeline_mode = #tpu.pipeline_mode<synchronous>, transform_indices = @transform_1, window_bounds = array<i64: 32, 128>}, {transform_indices = @transform_2, window_bounds = array<i64: 8, 32>}, {transform_indices = @transform_3, window_bounds = array<i64: 8, 32>}, {transform_indices = @transform_4, window_bounds = array<i64: 8, 8, 32>}]} {
    %c0 = arith.constant 0 : index
    %c0_0 = arith.constant 0 : index
    %0 = vector.load %arg3[%c0, %c0_0] : memref<8x32xf32, #tpu.memory_space<vmem>>, vector<8x32xf32>
    %c0_1 = arith.constant 0 : index
    %c0_2 = arith.constant 0 : index
    %1 = vector.load %arg4[%c0_1, %c0_2] : memref<8x32xf32, #tpu.memory_space<vmem>>, vector<8x32xf32>
    %c0_i32 = arith.constant 0 : i32
    %2 = arith.index_cast %c0_i32 : i32 to index
    %c0_3 = arith.constant 0 : index
    %c0_4 = arith.constant 0 : index
    %3 = vector.load %arg1[%2, %c0_3, %c0_4] : memref<8x8x128xf32, #tpu.memory_space<vmem>>, vector<1x8x128xf32>
    %4 = vector.shape_cast %3 : vector<1x8x128xf32> to vector<8x128xf32>
    %c0_5 = arith.constant 0 : index
    %c0_6 = arith.constant 0 : index
    %5 = vector.load %arg2[%c0_5, %c0_6] : memref<32x128xf32, #tpu.memory_space<vmem>>, vector<32x128xf32>
    %cst = arith.constant dense<0.000000e+00> : vector<8x128xf32>
    %6 = tpu.matmul %0, %5, %cst {dimension_numbers = #tpu.dot_dimension_numbers<[1], [0], [0], [1], [0, 0, 1, 1], [], []>} : vector<8x32xf32>, vector<32x128xf32>, vector<8x128xf32> -> vector<8x128xf32>
    %7 = arith.addf %4, %6 : vector<8x128xf32>
    %8 = vector.extract_strided_slice %7 {offsets = [0, 0], sizes = [8, 32], strides = [1, 1]} : vector<8x128xf32> to vector<8x32xf32>
    %9 = arith.negf %8 : vector<8x32xf32>
    %10 = math.exp %9 : vector<8x32xf32>
    %cst_7 = arith.constant 1.000000e+00 : f32
    %11 = vector.broadcast %cst_7 : f32 to vector<8x32xf32>
    %12 = arith.addf %11, %10 : vector<8x32xf32>
    %13 = arith.divf %11, %12 : vector<8x32xf32>
    %14 = vector.extract_strided_slice %7 {offsets = [0, 32], sizes = [8, 32], strides = [1, 1]} : vector<8x128xf32> to vector<8x32xf32>
    %15 = arith.negf %14 : vector<8x32xf32>
    %16 = math.exp %15 : vector<8x32xf32>
    %cst_8 = arith.constant 1.000000e+00 : f32
    %17 = vector.broadcast %cst_8 : f32 to vector<8x32xf32>
    %18 = arith.addf %17, %16 : vector<8x32xf32>
    %19 = arith.divf %17, %18 : vector<8x32xf32>
    %20 = vector.extract_strided_slice %7 {offsets = [0, 64], sizes = [8, 32], strides = [1, 1]} : vector<8x128xf32> to vector<8x32xf32>
    %21 = math.tanh %20 : vector<8x32xf32>
    %22 = vector.extract_strided_slice %7 {offsets = [0, 96], sizes = [8, 32], strides = [1, 1]} : vector<8x128xf32> to vector<8x32xf32>
    %23 = arith.negf %22 : vector<8x32xf32>
    %24 = math.exp %23 : vector<8x32xf32>
    %cst_9 = arith.constant 1.000000e+00 : f32
    %25 = vector.broadcast %cst_9 : f32 to vector<8x32xf32>
    %26 = arith.addf %25, %24 : vector<8x32xf32>
    %27 = arith.divf %25, %26 : vector<8x32xf32>
    %28 = arith.mulf %19, %1 : vector<8x32xf32>
    %29 = arith.mulf %13, %21 : vector<8x32xf32>
    %30 = arith.addf %28, %29 : vector<8x32xf32>
    %31 = math.tanh %30 : vector<8x32xf32>
    %32 = arith.mulf %27, %31 : vector<8x32xf32>
    %33 = arith.index_cast %c0_i32 : i32 to index
    %c0_10 = arith.constant 0 : index
    %c0_11 = arith.constant 0 : index
    %34 = vector.load %arg5[%33, %c0_10, %c0_11] : memref<8x8x32xf32, #tpu.memory_space<vmem>>, vector<1x8x32xf32>
    %35 = vector.shape_cast %34 : vector<1x8x32xf32> to vector<8x32xf32>
    %36 = vector.shape_cast %32 : vector<8x32xf32> to vector<1x8x32xf32>
    tpu.vector_store %arg5[%33, %c0_10, %c0_11], %36 {strides = array<i32>} : memref<8x8x32xf32, #tpu.memory_space<vmem>>, vector<1x8x32xf32>,
    %c1_i32 = arith.constant 1 : i32
    %37 = arith.index_cast %c1_i32 : i32 to index
    %c0_12 = arith.constant 0 : index
    %c0_13 = arith.constant 0 : index
    %38 = vector.load %arg1[%37, %c0_12, %c0_13] : memref<8x8x128xf32, #tpu.memory_space<vmem>>, vector<1x8x128xf32>
    %39 = vector.shape_cast %38 : vector<1x8x128xf32> to vector<8x128xf32>
    %c0_14 = arith.constant 0 : index
    %c0_15 = arith.constant 0 : index
    %40 = vector.load %arg2[%c0_14, %c0_15] : memref<32x128xf32, #tpu.memory_space<vmem>>, vector<32x128xf32>
    %cst_16 = arith.constant dense<0.000000e+00> : vector<8x128xf32>
    %41 = tpu.matmul %32, %40, %cst_16 {dimension_numbers = #tpu.dot_dimension_numbers<[1], [0], [0], [1], [0, 0, 1, 1], [], []>} : vector<8x32xf32>, vector<32x128xf32>, vector<8x128xf32> -> vector<8x128xf32>
    %42 = arith.addf %39, %41 : vector<8x128xf32>
    %43 = vector.extract_strided_slice %42 {offsets = [0, 0], sizes = [8, 32], strides = [1, 1]} : vector<8x128xf32> to vector<8x32xf32>
    %44 = arith.negf %43 : vector<8x32xf32>
    %45 = math.exp %44 : vector<8x32xf32>
    %cst_17 = arith.constant 1.000000e+00 : f32
    %46 = vector.broadcast %cst_17 : f32 to vector<8x32xf32>
    %47 = arith.addf %46, %45 : vector<8x32xf32>
    %48 = arith.divf %46, %47 : vector<8x32xf32>
    %49 = vector.extract_strided_slice %42 {offsets = [0, 32], sizes = [8, 32], strides = [1, 1]} : vector<8x128xf32> to vector<8x32xf32>
    %50 = arith.negf %49 : vector<8x32xf32>
    %51 = math.exp %50 : vector<8x32xf32>
    %cst_18 = arith.constant 1.000000e+00 : f32
    %52 = vector.broadcast %cst_18 : f32 to vector<8x32xf32>
    %53 = arith.addf %52, %51 : vector<8x32xf32>
    %54 = arith.divf %52, %53 : vector<8x32xf32>
    %55 = vector.extract_strided_slice %42 {offsets = [0, 64], sizes = [8, 32], strides = [1, 1]} : vector<8x128xf32> to vector<8x32xf32>
    %56 = math.tanh %55 : vector<8x32xf32>
    %57 = vector.extract_strided_slice %42 {offsets = [0, 96], sizes = [8, 32], strides = [1, 1]} : vector<8x128xf32> to vector<8x32xf32>
    %58 = arith.negf %57 : vector<8x32xf32>
    %59 = math.exp %58 : vector<8x32xf32>
    %cst_19 = arith.constant 1.000000e+00 : f32
    %60 = vector.broadcast %cst_19 : f32 to vector<8x32xf32>
    %61 = arith.addf %60, %59 : vector<8x32xf32>
    %62 = arith.divf %60, %61 : vector<8x32xf32>
    %63 = arith.mulf %54, %30 : vector<8x32xf32>
    %64 = arith.mulf %48, %56 : vector<8x32xf32>
    %65 = arith.addf %63, %64 : vector<8x32xf32>
    %66 = math.tanh %65 : vector<8x32xf32>
    %67 = arith.mulf %62, %66 : vector<8x32xf32>
    %68 = arith.index_cast %c1_i32 : i32 to index
    %c0_20 = arith.constant 0 : index
    %c0_21 = arith.constant 0 : index
    %69 = vector.load %arg5[%68, %c0_20, %c0_21] : memref<8x8x32xf32, #tpu.memory_space<vmem>>, vector<1x8x32xf32>
    %70 = vector.shape_cast %69 : vector<1x8x32xf32> to vector<8x32xf32>
    %71 = vector.shape_cast %67 : vector<8x32xf32> to vector<1x8x32xf32>
    tpu.vector_store %arg5[%68, %c0_20, %c0_21], %71 {strides = array<i32>} : memref<8x8x32xf32, #tpu.memory_space<vmem>>, vector<1x8x32xf32>,
    %c2_i32 = arith.constant 2 : i32
    %72 = arith.index_cast %c2_i32 : i32 to index
    %c0_22 = arith.constant 0 : index
    %c0_23 = arith.constant 0 : index
    %73 = vector.load %arg1[%72, %c0_22, %c0_23] : memref<8x8x128xf32, #tpu.memory_space<vmem>>, vector<1x8x128xf32>
    %74 = vector.shape_cast %73 : vector<1x8x128xf32> to vector<8x128xf32>
    %c0_24 = arith.constant 0 : index
    %c0_25 = arith.constant 0 : index
    %75 = vector.load %arg2[%c0_24, %c0_25] : memref<32x128xf32, #tpu.memory_space<vmem>>, vector<32x128xf32>
    %cst_26 = arith.constant dense<0.000000e+00> : vector<8x128xf32>
    %76 = tpu.matmul %67, %75, %cst_26 {dimension_numbers = #tpu.dot_dimension_numbers<[1], [0], [0], [1], [0, 0, 1, 1], [], []>} : vector<8x32xf32>, vector<32x128xf32>, vector<8x128xf32> -> vector<8x128xf32>
    %77 = arith.addf %74, %76 : vector<8x128xf32>
    %78 = vector.extract_strided_slice %77 {offsets = [0, 0], sizes = [8, 32], strides = [1, 1]} : vector<8x128xf32> to vector<8x32xf32>
    %79 = arith.negf %78 : vector<8x32xf32>
    %80 = math.exp %79 : vector<8x32xf32>
    %cst_27 = arith.constant 1.000000e+00 : f32
    %81 = vector.broadcast %cst_27 : f32 to vector<8x32xf32>
    %82 = arith.addf %81, %80 : vector<8x32xf32>
    %83 = arith.divf %81, %82 : vector<8x32xf32>
    %84 = vector.extract_strided_slice %77 {offsets = [0, 32], sizes = [8, 32], strides = [1, 1]} : vector<8x128xf32> to vector<8x32xf32>
    %85 = arith.negf %84 : vector<8x32xf32>
    %86 = math.exp %85 : vector<8x32xf32>
    %cst_28 = arith.constant 1.000000e+00 : f32
    %87 = vector.broadcast %cst_28 : f32 to vector<8x32xf32>
    %88 = arith.addf %87, %86 : vector<8x32xf32>
    %89 = arith.divf %87, %88 : vector<8x32xf32>
    %90 = vector.extract_strided_slice %77 {offsets = [0, 64], sizes = [8, 32], strides = [1, 1]} : vector<8x128xf32> to vector<8x32xf32>
    %91 = math.tanh %90 : vector<8x32xf32>
    %92 = vector.extract_strided_slice %77 {offsets = [0, 96], sizes = [8, 32], strides = [1, 1]} : vector<8x128xf32> to vector<8x32xf32>
    %93 = arith.negf %92 : vector<8x32xf32>
    %94 = math.exp %93 : vector<8x32xf32>
    %cst_29 = arith.constant 1.000000e+00 : f32
    %95 = vector.broadcast %cst_29 : f32 to vector<8x32xf32>
    %96 = arith.addf %95, %94 : vector<8x32xf32>
    %97 = arith.divf %95, %96 : vector<8x32xf32>
    %98 = arith.mulf %89, %65 : vector<8x32xf32>
    %99 = arith.mulf %83, %91 : vector<8x32xf32>
    %100 = arith.addf %98, %99 : vector<8x32xf32>
    %101 = math.tanh %100 : vector<8x32xf32>
    %102 = arith.mulf %97, %101 : vector<8x32xf32>
    %103 = arith.index_cast %c2_i32 : i32 to index
    %c0_30 = arith.constant 0 : index
    %c0_31 = arith.constant 0 : index
    %104 = vector.load %arg5[%103, %c0_30, %c0_31] : memref<8x8x32xf32, #tpu.memory_space<vmem>>, vector<1x8x32xf32>
    %105 = vector.shape_cast %104 : vector<1x8x32xf32> to vector<8x32xf32>
    %106 = vector.shape_cast %102 : vector<8x32xf32> to vector<1x8x32xf32>
    tpu.vector_store %arg5[%103, %c0_30, %c0_31], %106 {strides = array<i32>} : memref<8x8x32xf32, #tpu.memory_space<vmem>>, vector<1x8x32xf32>,
    %c3_i32 = arith.constant 3 : i32
    %107 = arith.index_cast %c3_i32 : i32 to index
    %c0_32 = arith.constant 0 : index
    %c0_33 = arith.constant 0 : index
    %108 = vector.load %arg1[%107, %c0_32, %c0_33] : memref<8x8x128xf32, #tpu.memory_space<vmem>>, vector<1x8x128xf32>
    %109 = vector.shape_cast %108 : vector<1x8x128xf32> to vector<8x128xf32>
    %c0_34 = arith.constant 0 : index
    %c0_35 = arith.constant 0 : index
    %110 = vector.load %arg2[%c0_34, %c0_35] : memref<32x128xf32, #tpu.memory_space<vmem>>, vector<32x128xf32>
    %cst_36 = arith.constant dense<0.000000e+00> : vector<8x128xf32>
    %111 = tpu.matmul %102, %110, %cst_36 {dimension_numbers = #tpu.dot_dimension_numbers<[1], [0], [0], [1], [0, 0, 1, 1], [], []>} : vector<8x32xf32>, vector<32x128xf32>, vector<8x128xf32> -> vector<8x128xf32>
    %112 = arith.addf %109, %111 : vector<8x128xf32>
    %113 = vector.extract_strided_slice %112 {offsets = [0, 0], sizes = [8, 32], strides = [1, 1]} : vector<8x128xf32> to vector<8x32xf32>
    %114 = arith.negf %113 : vector<8x32xf32>
    %115 = math.exp %114 : vector<8x32xf32>
    %cst_37 = arith.constant 1.000000e+00 : f32
    %116 = vector.broadcast %cst_37 : f32 to vector<8x32xf32>
    %117 = arith.addf %116, %115 : vector<8x32xf32>
    %118 = arith.divf %116, %117 : vector<8x32xf32>
    %119 = vector.extract_strided_slice %112 {offsets = [0, 32], sizes = [8, 32], strides = [1, 1]} : vector<8x128xf32> to vector<8x32xf32>
    %120 = arith.negf %119 : vector<8x32xf32>
    %121 = math.exp %120 : vector<8x32xf32>
    %cst_38 = arith.constant 1.000000e+00 : f32
    %122 = vector.broadcast %cst_38 : f32 to vector<8x32xf32>
    %123 = arith.addf %122, %121 : vector<8x32xf32>
    %124 = arith.divf %122, %123 : vector<8x32xf32>
    %125 = vector.extract_strided_slice %112 {offsets = [0, 64], sizes = [8, 32], strides = [1, 1]} : vector<8x128xf32> to vector<8x32xf32>
    %126 = math.tanh %125 : vector<8x32xf32>
    %127 = vector.extract_strided_slice %112 {offsets = [0, 96], sizes = [8, 32], strides = [1, 1]} : vector<8x128xf32> to vector<8x32xf32>
    %128 = arith.negf %127 : vector<8x32xf32>
    %129 = math.exp %128 : vector<8x32xf32>
    %cst_39 = arith.constant 1.000000e+00 : f32
    %130 = vector.broadcast %cst_39 : f32 to vector<8x32xf32>
    %131 = arith.addf %130, %129 : vector<8x32xf32>
    %132 = arith.divf %130, %131 : vector<8x32xf32>
    %133 = arith.mulf %124, %100 : vector<8x32xf32>
    %134 = arith.mulf %118, %126 : vector<8x32xf32>
    %135 = arith.addf %133, %134 : vector<8x32xf32>
    %136 = math.tanh %135 : vector<8x32xf32>
    %137 = arith.mulf %132, %136 : vector<8x32xf32>
    %138 = arith.index_cast %c3_i32 : i32 to index
    %c0_40 = arith.constant 0 : index
    %c0_41 = arith.constant 0 : index
    %139 = vector.load %arg5[%138, %c0_40, %c0_41] : memref<8x8x32xf32, #tpu.memory_space<vmem>>, vector<1x8x32xf32>
    %140 = vector.shape_cast %139 : vector<1x8x32xf32> to vector<8x32xf32>
    %141 = vector.shape_cast %137 : vector<8x32xf32> to vector<1x8x32xf32>
    tpu.vector_store %arg5[%138, %c0_40, %c0_41], %141 {strides = array<i32>} : memref<8x8x32xf32, #tpu.memory_space<vmem>>, vector<1x8x32xf32>,
    %c4_i32 = arith.constant 4 : i32
    %142 = arith.index_cast %c4_i32 : i32 to index
    %c0_42 = arith.constant 0 : index
    %c0_43 = arith.constant 0 : index
    %143 = vector.load %arg1[%142, %c0_42, %c0_43] : memref<8x8x128xf32, #tpu.memory_space<vmem>>, vector<1x8x128xf32>
    %144 = vector.shape_cast %143 : vector<1x8x128xf32> to vector<8x128xf32>
    %c0_44 = arith.constant 0 : index
    %c0_45 = arith.constant 0 : index
    %145 = vector.load %arg2[%c0_44, %c0_45] : memref<32x128xf32, #tpu.memory_space<vmem>>, vector<32x128xf32>
    %cst_46 = arith.constant dense<0.000000e+00> : vector<8x128xf32>
    %146 = tpu.matmul %137, %145, %cst_46 {dimension_numbers = #tpu.dot_dimension_numbers<[1], [0], [0], [1], [0, 0, 1, 1], [], []>} : vector<8x32xf32>, vector<32x128xf32>, vector<8x128xf32> -> vector<8x128xf32>
    %147 = arith.addf %144, %146 : vector<8x128xf32>
    %148 = vector.extract_strided_slice %147 {offsets = [0, 0], sizes = [8, 32], strides = [1, 1]} : vector<8x128xf32> to vector<8x32xf32>
    %149 = arith.negf %148 : vector<8x32xf32>
    %150 = math.exp %149 : vector<8x32xf32>
    %cst_47 = arith.constant 1.000000e+00 : f32
    %151 = vector.broadcast %cst_47 : f32 to vector<8x32xf32>
    %152 = arith.addf %151, %150 : vector<8x32xf32>
    %153 = arith.divf %151, %152 : vector<8x32xf32>
    %154 = vector.extract_strided_slice %147 {offsets = [0, 32], sizes = [8, 32], strides = [1, 1]} : vector<8x128xf32> to vector<8x32xf32>
    %155 = arith.negf %154 : vector<8x32xf32>
    %156 = math.exp %155 : vector<8x32xf32>
    %cst_48 = arith.constant 1.000000e+00 : f32
    %157 = vector.broadcast %cst_48 : f32 to vector<8x32xf32>
    %158 = arith.addf %157, %156 : vector<8x32xf32>
    %159 = arith.divf %157, %158 : vector<8x32xf32>
    %160 = vector.extract_strided_slice %147 {offsets = [0, 64], sizes = [8, 32], strides = [1, 1]} : vector<8x128xf32> to vector<8x32xf32>
    %161 = math.tanh %160 : vector<8x32xf32>
    %162 = vector.extract_strided_slice %147 {offsets = [0, 96], sizes = [8, 32], strides = [1, 1]} : vector<8x128xf32> to vector<8x32xf32>
    %163 = arith.negf %162 : vector<8x32xf32>
    %164 = math.exp %163 : vector<8x32xf32>
    %cst_49 = arith.constant 1.000000e+00 : f32
    %165 = vector.broadcast %cst_49 : f32 to vector<8x32xf32>
    %166 = arith.addf %165, %164 : vector<8x32xf32>
    %167 = arith.divf %165, %166 : vector<8x32xf32>
    %168 = arith.mulf %159, %135 : vector<8x32xf32>
    %169 = arith.mulf %153, %161 : vector<8x32xf32>
    %170 = arith.addf %168, %169 : vector<8x32xf32>
    %171 = math.tanh %170 : vector<8x32xf32>
    %172 = arith.mulf %167, %171 : vector<8x32xf32>
    %173 = arith.index_cast %c4_i32 : i32 to index
    %c0_50 = arith.constant 0 : index
    %c0_51 = arith.constant 0 : index
    %174 = vector.load %arg5[%173, %c0_50, %c0_51] : memref<8x8x32xf32, #tpu.memory_space<vmem>>, vector<1x8x32xf32>
    %175 = vector.shape_cast %174 : vector<1x8x32xf32> to vector<8x32xf32>
    %176 = vector.shape_cast %172 : vector<8x32xf32> to vector<1x8x32xf32>
    tpu.vector_store %arg5[%173, %c0_50, %c0_51], %176 {strides = array<i32>} : memref<8x8x32xf32, #tpu.memory_space<vmem>>, vector<1x8x32xf32>,
    %c5_i32 = arith.constant 5 : i32
    %177 = arith.index_cast %c5_i32 : i32 to index
    %c0_52 = arith.constant 0 : index
    %c0_53 = arith.constant 0 : index
    %178 = vector.load %arg1[%177, %c0_52, %c0_53] : memref<8x8x128xf32, #tpu.memory_space<vmem>>, vector<1x8x128xf32>
    %179 = vector.shape_cast %178 : vector<1x8x128xf32> to vector<8x128xf32>
    %c0_54 = arith.constant 0 : index
    %c0_55 = arith.constant 0 : index
    %180 = vector.load %arg2[%c0_54, %c0_55] : memref<32x128xf32, #tpu.memory_space<vmem>>, vector<32x128xf32>
    %cst_56 = arith.constant dense<0.000000e+00> : vector<8x128xf32>
    %181 = tpu.matmul %172, %180, %cst_56 {dimension_numbers = #tpu.dot_dimension_numbers<[1], [0], [0], [1], [0, 0, 1, 1], [], []>} : vector<8x32xf32>, vector<32x128xf32>, vector<8x128xf32> -> vector<8x128xf32>
    %182 = arith.addf %179, %181 : vector<8x128xf32>
    %183 = vector.extract_strided_slice %182 {offsets = [0, 0], sizes = [8, 32], strides = [1, 1]} : vector<8x128xf32> to vector<8x32xf32>
    %184 = arith.negf %183 : vector<8x32xf32>
    %185 = math.exp %184 : vector<8x32xf32>
    %cst_57 = arith.constant 1.000000e+00 : f32
    %186 = vector.broadcast %cst_57 : f32 to vector<8x32xf32>
    %187 = arith.addf %186, %185 : vector<8x32xf32>
    %188 = arith.divf %186, %187 : vector<8x32xf32>
    %189 = vector.extract_strided_slice %182 {offsets = [0, 32], sizes = [8, 32], strides = [1, 1]} : vector<8x128xf32> to vector<8x32xf32>
    %190 = arith.negf %189 : vector<8x32xf32>
    %191 = math.exp %190 : vector<8x32xf32>
    %cst_58 = arith.constant 1.000000e+00 : f32
    %192 = vector.broadcast %cst_58 : f32 to vector<8x32xf32>
    %193 = arith.addf %192, %191 : vector<8x32xf32>
    %194 = arith.divf %192, %193 : vector<8x32xf32>
    %195 = vector.extract_strided_slice %182 {offsets = [0, 64], sizes = [8, 32], strides = [1, 1]} : vector<8x128xf32> to vector<8x32xf32>
    %196 = math.tanh %195 : vector<8x32xf32>
    %197 = vector.extract_strided_slice %182 {offsets = [0, 96], sizes = [8, 32], strides = [1, 1]} : vector<8x128xf32> to vector<8x32xf32>
    %198 = arith.negf %197 : vector<8x32xf32>
    %199 = math.exp %198 : vector<8x32xf32>
    %cst_59 = arith.constant 1.000000e+00 : f32
    %200 = vector.broadcast %cst_59 : f32 to vector<8x32xf32>
    %201 = arith.addf %200, %199 : vector<8x32xf32>
    %202 = arith.divf %200, %201 : vector<8x32xf32>
    %203 = arith.mulf %194, %170 : vector<8x32xf32>
    %204 = arith.mulf %188, %196 : vector<8x32xf32>
    %205 = arith.addf %203, %204 : vector<8x32xf32>
    %206 = math.tanh %205 : vector<8x32xf32>
    %207 = arith.mulf %202, %206 : vector<8x32xf32>
    %208 = arith.index_cast %c5_i32 : i32 to index
    %c0_60 = arith.constant 0 : index
    %c0_61 = arith.constant 0 : index
    %209 = vector.load %arg5[%208, %c0_60, %c0_61] : memref<8x8x32xf32, #tpu.memory_space<vmem>>, vector<1x8x32xf32>
    %210 = vector.shape_cast %209 : vector<1x8x32xf32> to vector<8x32xf32>
    %211 = vector.shape_cast %207 : vector<8x32xf32> to vector<1x8x32xf32>
    tpu.vector_store %arg5[%208, %c0_60, %c0_61], %211 {strides = array<i32>} : memref<8x8x32xf32, #tpu.memory_space<vmem>>, vector<1x8x32xf32>,
    %c6_i32 = arith.constant 6 : i32
    %212 = arith.index_cast %c6_i32 : i32 to index
    %c0_62 = arith.constant 0 : index
    %c0_63 = arith.constant 0 : index
    %213 = vector.load %arg1[%212, %c0_62, %c0_63] : memref<8x8x128xf32, #tpu.memory_space<vmem>>, vector<1x8x128xf32>
    %214 = vector.shape_cast %213 : vector<1x8x128xf32> to vector<8x128xf32>
    %c0_64 = arith.constant 0 : index
    %c0_65 = arith.constant 0 : index
    %215 = vector.load %arg2[%c0_64, %c0_65] : memref<32x128xf32, #tpu.memory_space<vmem>>, vector<32x128xf32>
    %cst_66 = arith.constant dense<0.000000e+00> : vector<8x128xf32>
    %216 = tpu.matmul %207, %215, %cst_66 {dimension_numbers = #tpu.dot_dimension_numbers<[1], [0], [0], [1], [0, 0, 1, 1], [], []>} : vector<8x32xf32>, vector<32x128xf32>, vector<8x128xf32> -> vector<8x128xf32>
    %217 = arith.addf %214, %216 : vector<8x128xf32>
    %218 = vector.extract_strided_slice %217 {offsets = [0, 0], sizes = [8, 32], strides = [1, 1]} : vector<8x128xf32> to vector<8x32xf32>
    %219 = arith.negf %218 : vector<8x32xf32>
    %220 = math.exp %219 : vector<8x32xf32>
    %cst_67 = arith.constant 1.000000e+00 : f32
    %221 = vector.broadcast %cst_67 : f32 to vector<8x32xf32>
    %222 = arith.addf %221, %220 : vector<8x32xf32>
    %223 = arith.divf %221, %222 : vector<8x32xf32>
    %224 = vector.extract_strided_slice %217 {offsets = [0, 32], sizes = [8, 32], strides = [1, 1]} : vector<8x128xf32> to vector<8x32xf32>
    %225 = arith.negf %224 : vector<8x32xf32>
    %226 = math.exp %225 : vector<8x32xf32>
    %cst_68 = arith.constant 1.000000e+00 : f32
    %227 = vector.broadcast %cst_68 : f32 to vector<8x32xf32>
    %228 = arith.addf %227, %226 : vector<8x32xf32>
    %229 = arith.divf %227, %228 : vector<8x32xf32>
    %230 = vector.extract_strided_slice %217 {offsets = [0, 64], sizes = [8, 32], strides = [1, 1]} : vector<8x128xf32> to vector<8x32xf32>
    %231 = math.tanh %230 : vector<8x32xf32>
    %232 = vector.extract_strided_slice %217 {offsets = [0, 96], sizes = [8, 32], strides = [1, 1]} : vector<8x128xf32> to vector<8x32xf32>
    %233 = arith.negf %232 : vector<8x32xf32>
    %234 = math.exp %233 : vector<8x32xf32>
    %cst_69 = arith.constant 1.000000e+00 : f32
    %235 = vector.broadcast %cst_69 : f32 to vector<8x32xf32>
    %236 = arith.addf %235, %234 : vector<8x32xf32>
    %237 = arith.divf %235, %236 : vector<8x32xf32>
    %238 = arith.mulf %229, %205 : vector<8x32xf32>
    %239 = arith.mulf %223, %231 : vector<8x32xf32>
    %240 = arith.addf %238, %239 : vector<8x32xf32>
    %241 = math.tanh %240 : vector<8x32xf32>
    %242 = arith.mulf %237, %241 : vector<8x32xf32>
    %243 = arith.index_cast %c6_i32 : i32 to index
    %c0_70 = arith.constant 0 : index
    %c0_71 = arith.constant 0 : index
    %244 = vector.load %arg5[%243, %c0_70, %c0_71] : memref<8x8x32xf32, #tpu.memory_space<vmem>>, vector<1x8x32xf32>
    %245 = vector.shape_cast %244 : vector<1x8x32xf32> to vector<8x32xf32>
    %246 = vector.shape_cast %242 : vector<8x32xf32> to vector<1x8x32xf32>
    tpu.vector_store %arg5[%243, %c0_70, %c0_71], %246 {strides = array<i32>} : memref<8x8x32xf32, #tpu.memory_space<vmem>>, vector<1x8x32xf32>,
    %c7_i32 = arith.constant 7 : i32
    %247 = arith.index_cast %c7_i32 : i32 to index
    %c0_72 = arith.constant 0 : index
    %c0_73 = arith.constant 0 : index
    %248 = vector.load %arg1[%247, %c0_72, %c0_73] : memref<8x8x128xf32, #tpu.memory_space<vmem>>, vector<1x8x128xf32>
    %249 = vector.shape_cast %248 : vector<1x8x128xf32> to vector<8x128xf32>
    %c0_74 = arith.constant 0 : index
    %c0_75 = arith.constant 0 : index
    %250 = vector.load %arg2[%c0_74, %c0_75] : memref<32x128xf32, #tpu.memory_space<vmem>>, vector<32x128xf32>
    %cst_76 = arith.constant dense<0.000000e+00> : vector<8x128xf32>
    %251 = tpu.matmul %242, %250, %cst_76 {dimension_numbers = #tpu.dot_dimension_numbers<[1], [0], [0], [1], [0, 0, 1, 1], [], []>} : vector<8x32xf32>, vector<32x128xf32>, vector<8x128xf32> -> vector<8x128xf32>
    %252 = arith.addf %249, %251 : vector<8x128xf32>
    %253 = vector.extract_strided_slice %252 {offsets = [0, 0], sizes = [8, 32], strides = [1, 1]} : vector<8x128xf32> to vector<8x32xf32>
    %254 = arith.negf %253 : vector<8x32xf32>
    %255 = math.exp %254 : vector<8x32xf32>
    %cst_77 = arith.constant 1.000000e+00 : f32
    %256 = vector.broadcast %cst_77 : f32 to vector<8x32xf32>
    %257 = arith.addf %256, %255 : vector<8x32xf32>
    %258 = arith.divf %256, %257 : vector<8x32xf32>
    %259 = vector.extract_strided_slice %252 {offsets = [0, 32], sizes = [8, 32], strides = [1, 1]} : vector<8x128xf32> to vector<8x32xf32>
    %260 = arith.negf %259 : vector<8x32xf32>
    %261 = math.exp %260 : vector<8x32xf32>
    %cst_78 = arith.constant 1.000000e+00 : f32
    %262 = vector.broadcast %cst_78 : f32 to vector<8x32xf32>
    %263 = arith.addf %262, %261 : vector<8x32xf32>
    %264 = arith.divf %262, %263 : vector<8x32xf32>
    %265 = vector.extract_strided_slice %252 {offsets = [0, 64], sizes = [8, 32], strides = [1, 1]} : vector<8x128xf32> to vector<8x32xf32>
    %266 = math.tanh %265 : vector<8x32xf32>
    %267 = vector.extract_strided_slice %252 {offsets = [0, 96], sizes = [8, 32], strides = [1, 1]} : vector<8x128xf32> to vector<8x32xf32>
    %268 = arith.negf %267 : vector<8x32xf32>
    %269 = math.exp %268 : vector<8x32xf32>
    %cst_79 = arith.constant 1.000000e+00 : f32
    %270 = vector.broadcast %cst_79 : f32 to vector<8x32xf32>
    %271 = arith.addf %270, %269 : vector<8x32xf32>
    %272 = arith.divf %270, %271 : vector<8x32xf32>
    %273 = arith.mulf %264, %240 : vector<8x32xf32>
    %274 = arith.mulf %258, %266 : vector<8x32xf32>
    %275 = arith.addf %273, %274 : vector<8x32xf32>
    %276 = math.tanh %275 : vector<8x32xf32>
    %277 = arith.mulf %272, %276 : vector<8x32xf32>
    %278 = arith.index_cast %c7_i32 : i32 to index
    %c0_80 = arith.constant 0 : index
    %c0_81 = arith.constant 0 : index
    %279 = vector.load %arg5[%278, %c0_80, %c0_81] : memref<8x8x32xf32, #tpu.memory_space<vmem>>, vector<1x8x32xf32>
    %280 = vector.shape_cast %279 : vector<1x8x32xf32> to vector<8x32xf32>
    %281 = vector.shape_cast %277 : vector<8x32xf32> to vector<1x8x32xf32>
    tpu.vector_store %arg5[%278, %c0_80, %c0_81], %281 {strides = array<i32>} : memref<8x8x32xf32, #tpu.memory_space<vmem>>, vector<1x8x32xf32>,
    %c8_i32 = arith.constant 8 : i32
    return
  }
  func.func @transform_0(%arg0: i32) -> (i32, i32, i32) {
    %c0_i32 = arith.constant 0 : i32
    %c0_i32_0 = arith.constant 0 : i32
    %c0_i32_1 = arith.constant 0 : i32
    return %c0_i32, %arg0, %c0_i32_0 : i32, i32, i32
  }
  func.func @transform_1(%arg0: i32) -> (i32, i32) {
    %c0_i32 = arith.constant 0 : i32
    %c0_i32_0 = arith.constant 0 : i32
    %c0_i32_1 = arith.constant 0 : i32
    return %c0_i32, %c0_i32_0 : i32, i32
  }
  func.func @transform_2(%arg0: i32) -> (i32, i32) {
    %c0_i32 = arith.constant 0 : i32
    %c0_i32_0 = arith.constant 0 : i32
    return %arg0, %c0_i32 : i32, i32
  }
  func.func @transform_3(%arg0: i32) -> (i32, i32) {
    %c0_i32 = arith.constant 0 : i32
    %c0_i32_0 = arith.constant 0 : i32
    return %arg0, %c0_i32 : i32, i32
  }
  func.func @transform_4(%arg0: i32) -> (i32, i32, i32) {
    %c0_i32 = arith.constant 0 : i32
    %c0_i32_0 = arith.constant 0 : i32
    %c0_i32_1 = arith.constant 0 : i32
    return %c0_i32, %arg0, %c0_i32_0 : i32, i32, i32
  }
}

module attributes {stable_mosaic.version = 11 : i64} {
  func.func @_lstm_final_fused_kernel(%arg0: i32, %arg1: memref<8x8x128xf32, #tpu.memory_space<vmem>>, %arg2: memref<32x128xf32, #tpu.memory_space<vmem>>, %arg3: memref<8x32xf32, #tpu.memory_space<vmem>>, %arg4: memref<8x32xf32, #tpu.memory_space<vmem>>, %arg5: memref<32x1xf32, #tpu.memory_space<vmem>>, %arg6: memref<1x1xf32, #tpu.memory_space<vmem>>, %arg7: memref<8x1xf32, #tpu.memory_space<vmem>>) attributes {dimension_semantics = [#tpu.dimension_semantics<parallel>], iteration_bounds = array<i64: 1>, scalar_prefetch = 0 : i64, scratch_operands = 0 : i64, tpu.core_type = #tpu.core_type<tc>, window_params = [{transform_indices = @transform_0, window_bounds = array<i64: 8, 8, 128>}, {pipeline_mode = #tpu.pipeline_mode<synchronous>, transform_indices = @transform_1, window_bounds = array<i64: 32, 128>}, {transform_indices = @transform_2, window_bounds = array<i64: 8, 32>}, {transform_indices = @transform_3, window_bounds = array<i64: 8, 32>}, {pipeline_mode = #tpu.pipeline_mode<synchronous>, transform_indices = @transform_4, window_bounds = array<i64: 32, 1>}, {pipeline_mode = #tpu.pipeline_mode<synchronous>, transform_indices = @transform_5, window_bounds = array<i64: 1, 1>}, {transform_indices = @transform_6, window_bounds = array<i64: 8, 1>}]} {
    %c0 = arith.constant 0 : index
    %c0_0 = arith.constant 0 : index
    %0 = vector.load %arg3[%c0, %c0_0] : memref<8x32xf32, #tpu.memory_space<vmem>>, vector<8x32xf32>
    %c0_1 = arith.constant 0 : index
    %c0_2 = arith.constant 0 : index
    %1 = vector.load %arg4[%c0_1, %c0_2] : memref<8x32xf32, #tpu.memory_space<vmem>>, vector<8x32xf32>
    %c0_i32 = arith.constant 0 : i32
    %2 = arith.index_cast %c0_i32 : i32 to index
    %c0_3 = arith.constant 0 : index
    %c0_4 = arith.constant 0 : index
    %3 = vector.load %arg1[%2, %c0_3, %c0_4] : memref<8x8x128xf32, #tpu.memory_space<vmem>>, vector<1x8x128xf32>
    %4 = vector.shape_cast %3 : vector<1x8x128xf32> to vector<8x128xf32>
    %c0_5 = arith.constant 0 : index
    %c0_6 = arith.constant 0 : index
    %5 = vector.load %arg2[%c0_5, %c0_6] : memref<32x128xf32, #tpu.memory_space<vmem>>, vector<32x128xf32>
    %cst = arith.constant dense<0.000000e+00> : vector<8x128xf32>
    %6 = tpu.matmul %0, %5, %cst {dimension_numbers = #tpu.dot_dimension_numbers<[1], [0], [0], [1], [0, 0, 1, 1], [], []>} : vector<8x32xf32>, vector<32x128xf32>, vector<8x128xf32> -> vector<8x128xf32>
    %7 = arith.addf %4, %6 : vector<8x128xf32>
    %8 = vector.extract_strided_slice %7 {offsets = [0, 0], sizes = [8, 32], strides = [1, 1]} : vector<8x128xf32> to vector<8x32xf32>
    %9 = arith.negf %8 : vector<8x32xf32>
    %10 = math.exp %9 : vector<8x32xf32>
    %cst_7 = arith.constant 1.000000e+00 : f32
    %11 = vector.broadcast %cst_7 : f32 to vector<8x32xf32>
    %12 = arith.addf %11, %10 : vector<8x32xf32>
    %13 = arith.divf %11, %12 : vector<8x32xf32>
    %14 = vector.extract_strided_slice %7 {offsets = [0, 32], sizes = [8, 32], strides = [1, 1]} : vector<8x128xf32> to vector<8x32xf32>
    %15 = arith.negf %14 : vector<8x32xf32>
    %16 = math.exp %15 : vector<8x32xf32>
    %cst_8 = arith.constant 1.000000e+00 : f32
    %17 = vector.broadcast %cst_8 : f32 to vector<8x32xf32>
    %18 = arith.addf %17, %16 : vector<8x32xf32>
    %19 = arith.divf %17, %18 : vector<8x32xf32>
    %20 = vector.extract_strided_slice %7 {offsets = [0, 64], sizes = [8, 32], strides = [1, 1]} : vector<8x128xf32> to vector<8x32xf32>
    %21 = math.tanh %20 : vector<8x32xf32>
    %22 = vector.extract_strided_slice %7 {offsets = [0, 96], sizes = [8, 32], strides = [1, 1]} : vector<8x128xf32> to vector<8x32xf32>
    %23 = arith.negf %22 : vector<8x32xf32>
    %24 = math.exp %23 : vector<8x32xf32>
    %cst_9 = arith.constant 1.000000e+00 : f32
    %25 = vector.broadcast %cst_9 : f32 to vector<8x32xf32>
    %26 = arith.addf %25, %24 : vector<8x32xf32>
    %27 = arith.divf %25, %26 : vector<8x32xf32>
    %28 = arith.mulf %19, %1 : vector<8x32xf32>
    %29 = arith.mulf %13, %21 : vector<8x32xf32>
    %30 = arith.addf %28, %29 : vector<8x32xf32>
    %31 = math.tanh %30 : vector<8x32xf32>
    %32 = arith.mulf %27, %31 : vector<8x32xf32>
    %c1_i32 = arith.constant 1 : i32
    %33 = arith.index_cast %c1_i32 : i32 to index
    %c0_10 = arith.constant 0 : index
    %c0_11 = arith.constant 0 : index
    %34 = vector.load %arg1[%33, %c0_10, %c0_11] : memref<8x8x128xf32, #tpu.memory_space<vmem>>, vector<1x8x128xf32>
    %35 = vector.shape_cast %34 : vector<1x8x128xf32> to vector<8x128xf32>
    %c0_12 = arith.constant 0 : index
    %c0_13 = arith.constant 0 : index
    %36 = vector.load %arg2[%c0_12, %c0_13] : memref<32x128xf32, #tpu.memory_space<vmem>>, vector<32x128xf32>
    %cst_14 = arith.constant dense<0.000000e+00> : vector<8x128xf32>
    %37 = tpu.matmul %32, %36, %cst_14 {dimension_numbers = #tpu.dot_dimension_numbers<[1], [0], [0], [1], [0, 0, 1, 1], [], []>} : vector<8x32xf32>, vector<32x128xf32>, vector<8x128xf32> -> vector<8x128xf32>
    %38 = arith.addf %35, %37 : vector<8x128xf32>
    %39 = vector.extract_strided_slice %38 {offsets = [0, 0], sizes = [8, 32], strides = [1, 1]} : vector<8x128xf32> to vector<8x32xf32>
    %40 = arith.negf %39 : vector<8x32xf32>
    %41 = math.exp %40 : vector<8x32xf32>
    %cst_15 = arith.constant 1.000000e+00 : f32
    %42 = vector.broadcast %cst_15 : f32 to vector<8x32xf32>
    %43 = arith.addf %42, %41 : vector<8x32xf32>
    %44 = arith.divf %42, %43 : vector<8x32xf32>
    %45 = vector.extract_strided_slice %38 {offsets = [0, 32], sizes = [8, 32], strides = [1, 1]} : vector<8x128xf32> to vector<8x32xf32>
    %46 = arith.negf %45 : vector<8x32xf32>
    %47 = math.exp %46 : vector<8x32xf32>
    %cst_16 = arith.constant 1.000000e+00 : f32
    %48 = vector.broadcast %cst_16 : f32 to vector<8x32xf32>
    %49 = arith.addf %48, %47 : vector<8x32xf32>
    %50 = arith.divf %48, %49 : vector<8x32xf32>
    %51 = vector.extract_strided_slice %38 {offsets = [0, 64], sizes = [8, 32], strides = [1, 1]} : vector<8x128xf32> to vector<8x32xf32>
    %52 = math.tanh %51 : vector<8x32xf32>
    %53 = vector.extract_strided_slice %38 {offsets = [0, 96], sizes = [8, 32], strides = [1, 1]} : vector<8x128xf32> to vector<8x32xf32>
    %54 = arith.negf %53 : vector<8x32xf32>
    %55 = math.exp %54 : vector<8x32xf32>
    %cst_17 = arith.constant 1.000000e+00 : f32
    %56 = vector.broadcast %cst_17 : f32 to vector<8x32xf32>
    %57 = arith.addf %56, %55 : vector<8x32xf32>
    %58 = arith.divf %56, %57 : vector<8x32xf32>
    %59 = arith.mulf %50, %30 : vector<8x32xf32>
    %60 = arith.mulf %44, %52 : vector<8x32xf32>
    %61 = arith.addf %59, %60 : vector<8x32xf32>
    %62 = math.tanh %61 : vector<8x32xf32>
    %63 = arith.mulf %58, %62 : vector<8x32xf32>
    %c2_i32 = arith.constant 2 : i32
    %64 = arith.index_cast %c2_i32 : i32 to index
    %c0_18 = arith.constant 0 : index
    %c0_19 = arith.constant 0 : index
    %65 = vector.load %arg1[%64, %c0_18, %c0_19] : memref<8x8x128xf32, #tpu.memory_space<vmem>>, vector<1x8x128xf32>
    %66 = vector.shape_cast %65 : vector<1x8x128xf32> to vector<8x128xf32>
    %c0_20 = arith.constant 0 : index
    %c0_21 = arith.constant 0 : index
    %67 = vector.load %arg2[%c0_20, %c0_21] : memref<32x128xf32, #tpu.memory_space<vmem>>, vector<32x128xf32>
    %cst_22 = arith.constant dense<0.000000e+00> : vector<8x128xf32>
    %68 = tpu.matmul %63, %67, %cst_22 {dimension_numbers = #tpu.dot_dimension_numbers<[1], [0], [0], [1], [0, 0, 1, 1], [], []>} : vector<8x32xf32>, vector<32x128xf32>, vector<8x128xf32> -> vector<8x128xf32>
    %69 = arith.addf %66, %68 : vector<8x128xf32>
    %70 = vector.extract_strided_slice %69 {offsets = [0, 0], sizes = [8, 32], strides = [1, 1]} : vector<8x128xf32> to vector<8x32xf32>
    %71 = arith.negf %70 : vector<8x32xf32>
    %72 = math.exp %71 : vector<8x32xf32>
    %cst_23 = arith.constant 1.000000e+00 : f32
    %73 = vector.broadcast %cst_23 : f32 to vector<8x32xf32>
    %74 = arith.addf %73, %72 : vector<8x32xf32>
    %75 = arith.divf %73, %74 : vector<8x32xf32>
    %76 = vector.extract_strided_slice %69 {offsets = [0, 32], sizes = [8, 32], strides = [1, 1]} : vector<8x128xf32> to vector<8x32xf32>
    %77 = arith.negf %76 : vector<8x32xf32>
    %78 = math.exp %77 : vector<8x32xf32>
    %cst_24 = arith.constant 1.000000e+00 : f32
    %79 = vector.broadcast %cst_24 : f32 to vector<8x32xf32>
    %80 = arith.addf %79, %78 : vector<8x32xf32>
    %81 = arith.divf %79, %80 : vector<8x32xf32>
    %82 = vector.extract_strided_slice %69 {offsets = [0, 64], sizes = [8, 32], strides = [1, 1]} : vector<8x128xf32> to vector<8x32xf32>
    %83 = math.tanh %82 : vector<8x32xf32>
    %84 = vector.extract_strided_slice %69 {offsets = [0, 96], sizes = [8, 32], strides = [1, 1]} : vector<8x128xf32> to vector<8x32xf32>
    %85 = arith.negf %84 : vector<8x32xf32>
    %86 = math.exp %85 : vector<8x32xf32>
    %cst_25 = arith.constant 1.000000e+00 : f32
    %87 = vector.broadcast %cst_25 : f32 to vector<8x32xf32>
    %88 = arith.addf %87, %86 : vector<8x32xf32>
    %89 = arith.divf %87, %88 : vector<8x32xf32>
    %90 = arith.mulf %81, %61 : vector<8x32xf32>
    %91 = arith.mulf %75, %83 : vector<8x32xf32>
    %92 = arith.addf %90, %91 : vector<8x32xf32>
    %93 = math.tanh %92 : vector<8x32xf32>
    %94 = arith.mulf %89, %93 : vector<8x32xf32>
    %c3_i32 = arith.constant 3 : i32
    %95 = arith.index_cast %c3_i32 : i32 to index
    %c0_26 = arith.constant 0 : index
    %c0_27 = arith.constant 0 : index
    %96 = vector.load %arg1[%95, %c0_26, %c0_27] : memref<8x8x128xf32, #tpu.memory_space<vmem>>, vector<1x8x128xf32>
    %97 = vector.shape_cast %96 : vector<1x8x128xf32> to vector<8x128xf32>
    %c0_28 = arith.constant 0 : index
    %c0_29 = arith.constant 0 : index
    %98 = vector.load %arg2[%c0_28, %c0_29] : memref<32x128xf32, #tpu.memory_space<vmem>>, vector<32x128xf32>
    %cst_30 = arith.constant dense<0.000000e+00> : vector<8x128xf32>
    %99 = tpu.matmul %94, %98, %cst_30 {dimension_numbers = #tpu.dot_dimension_numbers<[1], [0], [0], [1], [0, 0, 1, 1], [], []>} : vector<8x32xf32>, vector<32x128xf32>, vector<8x128xf32> -> vector<8x128xf32>
    %100 = arith.addf %97, %99 : vector<8x128xf32>
    %101 = vector.extract_strided_slice %100 {offsets = [0, 0], sizes = [8, 32], strides = [1, 1]} : vector<8x128xf32> to vector<8x32xf32>
    %102 = arith.negf %101 : vector<8x32xf32>
    %103 = math.exp %102 : vector<8x32xf32>
    %cst_31 = arith.constant 1.000000e+00 : f32
    %104 = vector.broadcast %cst_31 : f32 to vector<8x32xf32>
    %105 = arith.addf %104, %103 : vector<8x32xf32>
    %106 = arith.divf %104, %105 : vector<8x32xf32>
    %107 = vector.extract_strided_slice %100 {offsets = [0, 32], sizes = [8, 32], strides = [1, 1]} : vector<8x128xf32> to vector<8x32xf32>
    %108 = arith.negf %107 : vector<8x32xf32>
    %109 = math.exp %108 : vector<8x32xf32>
    %cst_32 = arith.constant 1.000000e+00 : f32
    %110 = vector.broadcast %cst_32 : f32 to vector<8x32xf32>
    %111 = arith.addf %110, %109 : vector<8x32xf32>
    %112 = arith.divf %110, %111 : vector<8x32xf32>
    %113 = vector.extract_strided_slice %100 {offsets = [0, 64], sizes = [8, 32], strides = [1, 1]} : vector<8x128xf32> to vector<8x32xf32>
    %114 = math.tanh %113 : vector<8x32xf32>
    %115 = vector.extract_strided_slice %100 {offsets = [0, 96], sizes = [8, 32], strides = [1, 1]} : vector<8x128xf32> to vector<8x32xf32>
    %116 = arith.negf %115 : vector<8x32xf32>
    %117 = math.exp %116 : vector<8x32xf32>
    %cst_33 = arith.constant 1.000000e+00 : f32
    %118 = vector.broadcast %cst_33 : f32 to vector<8x32xf32>
    %119 = arith.addf %118, %117 : vector<8x32xf32>
    %120 = arith.divf %118, %119 : vector<8x32xf32>
    %121 = arith.mulf %112, %92 : vector<8x32xf32>
    %122 = arith.mulf %106, %114 : vector<8x32xf32>
    %123 = arith.addf %121, %122 : vector<8x32xf32>
    %124 = math.tanh %123 : vector<8x32xf32>
    %125 = arith.mulf %120, %124 : vector<8x32xf32>
    %c4_i32 = arith.constant 4 : i32
    %126 = arith.index_cast %c4_i32 : i32 to index
    %c0_34 = arith.constant 0 : index
    %c0_35 = arith.constant 0 : index
    %127 = vector.load %arg1[%126, %c0_34, %c0_35] : memref<8x8x128xf32, #tpu.memory_space<vmem>>, vector<1x8x128xf32>
    %128 = vector.shape_cast %127 : vector<1x8x128xf32> to vector<8x128xf32>
    %c0_36 = arith.constant 0 : index
    %c0_37 = arith.constant 0 : index
    %129 = vector.load %arg2[%c0_36, %c0_37] : memref<32x128xf32, #tpu.memory_space<vmem>>, vector<32x128xf32>
    %cst_38 = arith.constant dense<0.000000e+00> : vector<8x128xf32>
    %130 = tpu.matmul %125, %129, %cst_38 {dimension_numbers = #tpu.dot_dimension_numbers<[1], [0], [0], [1], [0, 0, 1, 1], [], []>} : vector<8x32xf32>, vector<32x128xf32>, vector<8x128xf32> -> vector<8x128xf32>
    %131 = arith.addf %128, %130 : vector<8x128xf32>
    %132 = vector.extract_strided_slice %131 {offsets = [0, 0], sizes = [8, 32], strides = [1, 1]} : vector<8x128xf32> to vector<8x32xf32>
    %133 = arith.negf %132 : vector<8x32xf32>
    %134 = math.exp %133 : vector<8x32xf32>
    %cst_39 = arith.constant 1.000000e+00 : f32
    %135 = vector.broadcast %cst_39 : f32 to vector<8x32xf32>
    %136 = arith.addf %135, %134 : vector<8x32xf32>
    %137 = arith.divf %135, %136 : vector<8x32xf32>
    %138 = vector.extract_strided_slice %131 {offsets = [0, 32], sizes = [8, 32], strides = [1, 1]} : vector<8x128xf32> to vector<8x32xf32>
    %139 = arith.negf %138 : vector<8x32xf32>
    %140 = math.exp %139 : vector<8x32xf32>
    %cst_40 = arith.constant 1.000000e+00 : f32
    %141 = vector.broadcast %cst_40 : f32 to vector<8x32xf32>
    %142 = arith.addf %141, %140 : vector<8x32xf32>
    %143 = arith.divf %141, %142 : vector<8x32xf32>
    %144 = vector.extract_strided_slice %131 {offsets = [0, 64], sizes = [8, 32], strides = [1, 1]} : vector<8x128xf32> to vector<8x32xf32>
    %145 = math.tanh %144 : vector<8x32xf32>
    %146 = vector.extract_strided_slice %131 {offsets = [0, 96], sizes = [8, 32], strides = [1, 1]} : vector<8x128xf32> to vector<8x32xf32>
    %147 = arith.negf %146 : vector<8x32xf32>
    %148 = math.exp %147 : vector<8x32xf32>
    %cst_41 = arith.constant 1.000000e+00 : f32
    %149 = vector.broadcast %cst_41 : f32 to vector<8x32xf32>
    %150 = arith.addf %149, %148 : vector<8x32xf32>
    %151 = arith.divf %149, %150 : vector<8x32xf32>
    %152 = arith.mulf %143, %123 : vector<8x32xf32>
    %153 = arith.mulf %137, %145 : vector<8x32xf32>
    %154 = arith.addf %152, %153 : vector<8x32xf32>
    %155 = math.tanh %154 : vector<8x32xf32>
    %156 = arith.mulf %151, %155 : vector<8x32xf32>
    %c5_i32 = arith.constant 5 : i32
    %157 = arith.index_cast %c5_i32 : i32 to index
    %c0_42 = arith.constant 0 : index
    %c0_43 = arith.constant 0 : index
    %158 = vector.load %arg1[%157, %c0_42, %c0_43] : memref<8x8x128xf32, #tpu.memory_space<vmem>>, vector<1x8x128xf32>
    %159 = vector.shape_cast %158 : vector<1x8x128xf32> to vector<8x128xf32>
    %c0_44 = arith.constant 0 : index
    %c0_45 = arith.constant 0 : index
    %160 = vector.load %arg2[%c0_44, %c0_45] : memref<32x128xf32, #tpu.memory_space<vmem>>, vector<32x128xf32>
    %cst_46 = arith.constant dense<0.000000e+00> : vector<8x128xf32>
    %161 = tpu.matmul %156, %160, %cst_46 {dimension_numbers = #tpu.dot_dimension_numbers<[1], [0], [0], [1], [0, 0, 1, 1], [], []>} : vector<8x32xf32>, vector<32x128xf32>, vector<8x128xf32> -> vector<8x128xf32>
    %162 = arith.addf %159, %161 : vector<8x128xf32>
    %163 = vector.extract_strided_slice %162 {offsets = [0, 0], sizes = [8, 32], strides = [1, 1]} : vector<8x128xf32> to vector<8x32xf32>
    %164 = arith.negf %163 : vector<8x32xf32>
    %165 = math.exp %164 : vector<8x32xf32>
    %cst_47 = arith.constant 1.000000e+00 : f32
    %166 = vector.broadcast %cst_47 : f32 to vector<8x32xf32>
    %167 = arith.addf %166, %165 : vector<8x32xf32>
    %168 = arith.divf %166, %167 : vector<8x32xf32>
    %169 = vector.extract_strided_slice %162 {offsets = [0, 32], sizes = [8, 32], strides = [1, 1]} : vector<8x128xf32> to vector<8x32xf32>
    %170 = arith.negf %169 : vector<8x32xf32>
    %171 = math.exp %170 : vector<8x32xf32>
    %cst_48 = arith.constant 1.000000e+00 : f32
    %172 = vector.broadcast %cst_48 : f32 to vector<8x32xf32>
    %173 = arith.addf %172, %171 : vector<8x32xf32>
    %174 = arith.divf %172, %173 : vector<8x32xf32>
    %175 = vector.extract_strided_slice %162 {offsets = [0, 64], sizes = [8, 32], strides = [1, 1]} : vector<8x128xf32> to vector<8x32xf32>
    %176 = math.tanh %175 : vector<8x32xf32>
    %177 = vector.extract_strided_slice %162 {offsets = [0, 96], sizes = [8, 32], strides = [1, 1]} : vector<8x128xf32> to vector<8x32xf32>
    %178 = arith.negf %177 : vector<8x32xf32>
    %179 = math.exp %178 : vector<8x32xf32>
    %cst_49 = arith.constant 1.000000e+00 : f32
    %180 = vector.broadcast %cst_49 : f32 to vector<8x32xf32>
    %181 = arith.addf %180, %179 : vector<8x32xf32>
    %182 = arith.divf %180, %181 : vector<8x32xf32>
    %183 = arith.mulf %174, %154 : vector<8x32xf32>
    %184 = arith.mulf %168, %176 : vector<8x32xf32>
    %185 = arith.addf %183, %184 : vector<8x32xf32>
    %186 = math.tanh %185 : vector<8x32xf32>
    %187 = arith.mulf %182, %186 : vector<8x32xf32>
    %c6_i32 = arith.constant 6 : i32
    %188 = arith.index_cast %c6_i32 : i32 to index
    %c0_50 = arith.constant 0 : index
    %c0_51 = arith.constant 0 : index
    %189 = vector.load %arg1[%188, %c0_50, %c0_51] : memref<8x8x128xf32, #tpu.memory_space<vmem>>, vector<1x8x128xf32>
    %190 = vector.shape_cast %189 : vector<1x8x128xf32> to vector<8x128xf32>
    %c0_52 = arith.constant 0 : index
    %c0_53 = arith.constant 0 : index
    %191 = vector.load %arg2[%c0_52, %c0_53] : memref<32x128xf32, #tpu.memory_space<vmem>>, vector<32x128xf32>
    %cst_54 = arith.constant dense<0.000000e+00> : vector<8x128xf32>
    %192 = tpu.matmul %187, %191, %cst_54 {dimension_numbers = #tpu.dot_dimension_numbers<[1], [0], [0], [1], [0, 0, 1, 1], [], []>} : vector<8x32xf32>, vector<32x128xf32>, vector<8x128xf32> -> vector<8x128xf32>
    %193 = arith.addf %190, %192 : vector<8x128xf32>
    %194 = vector.extract_strided_slice %193 {offsets = [0, 0], sizes = [8, 32], strides = [1, 1]} : vector<8x128xf32> to vector<8x32xf32>
    %195 = arith.negf %194 : vector<8x32xf32>
    %196 = math.exp %195 : vector<8x32xf32>
    %cst_55 = arith.constant 1.000000e+00 : f32
    %197 = vector.broadcast %cst_55 : f32 to vector<8x32xf32>
    %198 = arith.addf %197, %196 : vector<8x32xf32>
    %199 = arith.divf %197, %198 : vector<8x32xf32>
    %200 = vector.extract_strided_slice %193 {offsets = [0, 32], sizes = [8, 32], strides = [1, 1]} : vector<8x128xf32> to vector<8x32xf32>
    %201 = arith.negf %200 : vector<8x32xf32>
    %202 = math.exp %201 : vector<8x32xf32>
    %cst_56 = arith.constant 1.000000e+00 : f32
    %203 = vector.broadcast %cst_56 : f32 to vector<8x32xf32>
    %204 = arith.addf %203, %202 : vector<8x32xf32>
    %205 = arith.divf %203, %204 : vector<8x32xf32>
    %206 = vector.extract_strided_slice %193 {offsets = [0, 64], sizes = [8, 32], strides = [1, 1]} : vector<8x128xf32> to vector<8x32xf32>
    %207 = math.tanh %206 : vector<8x32xf32>
    %208 = vector.extract_strided_slice %193 {offsets = [0, 96], sizes = [8, 32], strides = [1, 1]} : vector<8x128xf32> to vector<8x32xf32>
    %209 = arith.negf %208 : vector<8x32xf32>
    %210 = math.exp %209 : vector<8x32xf32>
    %cst_57 = arith.constant 1.000000e+00 : f32
    %211 = vector.broadcast %cst_57 : f32 to vector<8x32xf32>
    %212 = arith.addf %211, %210 : vector<8x32xf32>
    %213 = arith.divf %211, %212 : vector<8x32xf32>
    %214 = arith.mulf %205, %185 : vector<8x32xf32>
    %215 = arith.mulf %199, %207 : vector<8x32xf32>
    %216 = arith.addf %214, %215 : vector<8x32xf32>
    %217 = math.tanh %216 : vector<8x32xf32>
    %218 = arith.mulf %213, %217 : vector<8x32xf32>
    %c7_i32 = arith.constant 7 : i32
    %219 = arith.index_cast %c7_i32 : i32 to index
    %c0_58 = arith.constant 0 : index
    %c0_59 = arith.constant 0 : index
    %220 = vector.load %arg1[%219, %c0_58, %c0_59] : memref<8x8x128xf32, #tpu.memory_space<vmem>>, vector<1x8x128xf32>
    %221 = vector.shape_cast %220 : vector<1x8x128xf32> to vector<8x128xf32>
    %c0_60 = arith.constant 0 : index
    %c0_61 = arith.constant 0 : index
    %222 = vector.load %arg2[%c0_60, %c0_61] : memref<32x128xf32, #tpu.memory_space<vmem>>, vector<32x128xf32>
    %cst_62 = arith.constant dense<0.000000e+00> : vector<8x128xf32>
    %223 = tpu.matmul %218, %222, %cst_62 {dimension_numbers = #tpu.dot_dimension_numbers<[1], [0], [0], [1], [0, 0, 1, 1], [], []>} : vector<8x32xf32>, vector<32x128xf32>, vector<8x128xf32> -> vector<8x128xf32>
    %224 = arith.addf %221, %223 : vector<8x128xf32>
    %225 = vector.extract_strided_slice %224 {offsets = [0, 0], sizes = [8, 32], strides = [1, 1]} : vector<8x128xf32> to vector<8x32xf32>
    %226 = arith.negf %225 : vector<8x32xf32>
    %227 = math.exp %226 : vector<8x32xf32>
    %cst_63 = arith.constant 1.000000e+00 : f32
    %228 = vector.broadcast %cst_63 : f32 to vector<8x32xf32>
    %229 = arith.addf %228, %227 : vector<8x32xf32>
    %230 = arith.divf %228, %229 : vector<8x32xf32>
    %231 = vector.extract_strided_slice %224 {offsets = [0, 32], sizes = [8, 32], strides = [1, 1]} : vector<8x128xf32> to vector<8x32xf32>
    %232 = arith.negf %231 : vector<8x32xf32>
    %233 = math.exp %232 : vector<8x32xf32>
    %cst_64 = arith.constant 1.000000e+00 : f32
    %234 = vector.broadcast %cst_64 : f32 to vector<8x32xf32>
    %235 = arith.addf %234, %233 : vector<8x32xf32>
    %236 = arith.divf %234, %235 : vector<8x32xf32>
    %237 = vector.extract_strided_slice %224 {offsets = [0, 64], sizes = [8, 32], strides = [1, 1]} : vector<8x128xf32> to vector<8x32xf32>
    %238 = math.tanh %237 : vector<8x32xf32>
    %239 = vector.extract_strided_slice %224 {offsets = [0, 96], sizes = [8, 32], strides = [1, 1]} : vector<8x128xf32> to vector<8x32xf32>
    %240 = arith.negf %239 : vector<8x32xf32>
    %241 = math.exp %240 : vector<8x32xf32>
    %cst_65 = arith.constant 1.000000e+00 : f32
    %242 = vector.broadcast %cst_65 : f32 to vector<8x32xf32>
    %243 = arith.addf %242, %241 : vector<8x32xf32>
    %244 = arith.divf %242, %243 : vector<8x32xf32>
    %245 = arith.mulf %236, %216 : vector<8x32xf32>
    %246 = arith.mulf %230, %238 : vector<8x32xf32>
    %247 = arith.addf %245, %246 : vector<8x32xf32>
    %248 = math.tanh %247 : vector<8x32xf32>
    %249 = arith.mulf %244, %248 : vector<8x32xf32>
    %c8_i32 = arith.constant 8 : i32
    %c0_66 = arith.constant 0 : index
    %c0_67 = arith.constant 0 : index
    %250 = vector.load %arg5[%c0_66, %c0_67] : memref<32x1xf32, #tpu.memory_space<vmem>>, vector<32x1xf32>
    %cst_68 = arith.constant dense<0.000000e+00> : vector<8x1xf32>
    %251 = tpu.matmul %249, %250, %cst_68 {dimension_numbers = #tpu.dot_dimension_numbers<[1], [0], [0], [1], [0, 0, 1, 1], [], []>} : vector<8x32xf32>, vector<32x1xf32>, vector<8x1xf32> -> vector<8x1xf32>
    %c0_69 = arith.constant 0 : index
    %c0_70 = arith.constant 0 : index
    %252 = vector.load %arg6[%c0_69, %c0_70] : memref<1x1xf32, #tpu.memory_space<vmem>>, vector<1x1xf32>
    %253 = vector.broadcast %252 : vector<1x1xf32> to vector<8x1xf32>
    %254 = arith.addf %251, %253 : vector<8x1xf32>
    %255 = arith.negf %254 : vector<8x1xf32>
    %256 = math.exp %255 : vector<8x1xf32>
    %cst_71 = arith.constant 1.000000e+00 : f32
    %257 = vector.broadcast %cst_71 : f32 to vector<8x1xf32>
    %258 = arith.addf %257, %256 : vector<8x1xf32>
    %259 = arith.divf %257, %258 : vector<8x1xf32>
    %c0_72 = arith.constant 0 : index
    %c0_73 = arith.constant 0 : index
    %260 = vector.load %arg7[%c0_72, %c0_73] : memref<8x1xf32, #tpu.memory_space<vmem>>, vector<8x1xf32>
    tpu.vector_store %arg7[%c0_72, %c0_73], %259 {strides = array<i32>} : memref<8x1xf32, #tpu.memory_space<vmem>>, vector<8x1xf32>,
    return
  }
  func.func @transform_0(%arg0: i32) -> (i32, i32, i32) {
    %c0_i32 = arith.constant 0 : i32
    %c0_i32_0 = arith.constant 0 : i32
    %c0_i32_1 = arith.constant 0 : i32
    return %c0_i32, %arg0, %c0_i32_0 : i32, i32, i32
  }
  func.func @transform_1(%arg0: i32) -> (i32, i32) {
    %c0_i32 = arith.constant 0 : i32
    %c0_i32_0 = arith.constant 0 : i32
    %c0_i32_1 = arith.constant 0 : i32
    return %c0_i32, %c0_i32_0 : i32, i32
  }
  func.func @transform_2(%arg0: i32) -> (i32, i32) {
    %c0_i32 = arith.constant 0 : i32
    %c0_i32_0 = arith.constant 0 : i32
    return %arg0, %c0_i32 : i32, i32
  }
  func.func @transform_3(%arg0: i32) -> (i32, i32) {
    %c0_i32 = arith.constant 0 : i32
    %c0_i32_0 = arith.constant 0 : i32
    return %arg0, %c0_i32 : i32, i32
  }
  func.func @transform_4(%arg0: i32) -> (i32, i32) {
    %c0_i32 = arith.constant 0 : i32
    %c0_i32_0 = arith.constant 0 : i32
    %c0_i32_1 = arith.constant 0 : i32
    return %c0_i32, %c0_i32_0 : i32, i32
  }
  func.func @transform_5(%arg0: i32) -> (i32, i32) {
    %c0_i32 = arith.constant 0 : i32
    %c0_i32_0 = arith.constant 0 : i32
    %c0_i32_1 = arith.constant 0 : i32
    return %c0_i32, %c0_i32_0 : i32, i32
  }
  func.func @transform_6(%arg0: i32) -> (i32, i32) {
    %c0_i32 = arith.constant 0 : i32
    %c0_i32_0 = arith.constant 0 : i32
    return %arg0, %c0_i32 : i32, i32
  }
}

</mosaic_0001>

<bundles_post_ra>
// kernel: lstm_model_forward.4
= control target key start
LH: loop header
LB: loop body
LE: loop exit
PB: predicated region body
PF: predicated region fallthrough
CT: control target
= control target key end

     0   :  { %vm31_vm0 = vcmask 130048   ;;  %s299_s1 = inlined_call_operand.vmem [shape: f32[16,128], index: 1, kind: input, shape index: {}]   ;;  %s300_s0 = inlined_call_operand.vmem [shape: f32[64,16], index: 0, kind: input, shape index: {}]   ;;  %s301_s2 = inlined_call_operand.vmem [shape: f32[1,128], index: 2, kind: input, shape index: {}]   ;;  %s302_s3 = inlined_call_operand.vmem [shape: f32[64,128], index: 3, kind: output, shape index: {}]  }
   0x1   :  { %v22_v0 = vld [vmem:[%s299_s1] sm:$0xff]  ;;  %v23_v1 = vld [vmem:[%s299_s1 + $0x8] sm:$0xff]  ;;  %v16_v7 = vld [vmem:[%s300_s0 + $0x10] sm:$0xff] }
   0x2   :  { %v14_v2 = vld [vmem:[%s300_s0] sm:$0xff]  ;;  %v208_v3 = vpack.c.bf16 %v23_v1, %v22_v0  ;;  %v15_v5 = vld [vmem:[%s300_s0 + $0x8] sm:$0xff]  ;;  %v20_v8 = vld [vmem:[%s300_s0 + $0x30] sm:$0xff] }
   0x3   :  { %196 = vmatprep.mubr.msk.f32.mxu0 %vm31_vm0, %v14_v2  ;;  %v18_v4 = vld [vmem:[%s300_s0 + $0x20] sm:$0xff]  ;;  %v19_v6 = vld [vmem:[%s300_s0 + $0x28] sm:$0xff]  ;;  %v17_v9 = vld [vmem:[%s300_s0 + $0x18] sm:$0xff] }
   0x4   :  { %202 = vmatprep.mubr.msk.f32.mxu1 %vm31_vm0, %v18_v4  ;;  %209 = vmatprep.subr.bf16.mxu0 %v208_v3  ;;  %v21_v10 = vld [vmem:[%s300_s0 + $0x38] sm:$0xff]  ;;  %v173_v11 = vld [vmem:[%s301_s2] ss:$0 sm:$0xff] }
   0x5   :  { %212 = vmatprep.subr.bf16.mxu1 %v208_v3  ;;  %211 = vmatpush3.bf16.msra.mxu0 %v208_v3 }
   0x6   :  { %213 = vmatpush3.bf16.msra.mxu1 %v208_v3 }
   0x8   :  { %197 = vmatmul.mubr.msk.f32.vlgmr.msra.gmra.mrb[0].mxu0 %vm31_vm0, %v15_v5 }
   0x9   :  { %203 = vmatmul.mubr.msk.f32.vlgmr.msra.gmra.mrb[0].mxu1 %vm31_vm0, %v19_v6  ;;  %199 = vmatprep.mubr.msk.f32.mxu0 %vm31_vm0, %v16_v7 }
   0xa   :  { %205 = vmatprep.mubr.msk.f32.mxu1 %vm31_vm0, %v20_v8 }
   0xc   :  { %200 = vmatmul.mubr.msk.f32.gmra.mrb[2].mxu0 %vm31_vm0, %v17_v9 }
   0xd   :  { %206 = vmatmul.mubr.msk.f32.gmra.mrb[2].mxu1 %vm31_vm0, %v21_v10 }
  0xdb   :  { %v198_v12 = vpop.f32.mrb[0].mxu0 }
  0xdc   :  { %v204_v13 = vpop.f32.mrb[0].mxu1  ;;  %v128_v14 = vadd.f32 %v198_v12, %v173_v11  ;;  %v122_v16 = vpop.f32.mrb[1].mxu0 }
  0xdd   :  { %v148_v15 = vadd.f32 %v204_v13, %v173_v11  ;;  %v142_v17 = vpop.f32.mrb[1].mxu1  ;;  %v123_v18 = vadd.f32 %v173_v11, %v122_v16 }
  0xde   :  { %v143_v19 = vadd.f32 %v173_v11, %v142_v17  ;;  %162 = vst [vmem:[%s302_s3 + $0x8] sm:$0xff] %v128_v14 }
  0xdf   :  { %166 = vst [vmem:[%s302_s3 + $0x28] sm:$0xff] %v148_v15  ;;  %161 = vst [vmem:[%s302_s3] sm:$0xff] %v123_v18  ;;  %v201_v20 = vpop.f32.mrb[2].mxu0 }
  0xe0   :  { %165 = vst [vmem:[%s302_s3 + $0x20] sm:$0xff] %v143_v19  ;;  %v207_v21 = vpop.f32.mrb[2].mxu1  ;;  %v138_v22 = vadd.f32 %v201_v20, %v173_v11  ;;  %v132_v24 = vpop.f32.mrb[3].mxu0 }
  0xe1   :  { %v158_v23 = vadd.f32 %v207_v21, %v173_v11  ;;  %v152_v25 = vpop.f32.mrb[3].mxu1  ;;  %v133_v26 = vadd.f32 %v173_v11, %v132_v24 }
  0xe2   :  { %v153_v27 = vadd.f32 %v173_v11, %v152_v25  ;;  %164 = vst [vmem:[%s302_s3 + $0x18] sm:$0xff] %v138_v22 }
  0xe3   :  { %168 = vst [vmem:[%s302_s3 + $0x38] sm:$0xff] %v158_v23  ;;  %163 = vst [vmem:[%s302_s3 + $0x10] sm:$0xff] %v133_v26 }
  0xe4   :  { %167 = vst [vmem:[%s302_s3 + $0x30] sm:$0xff] %v153_v27 }

// kernel: lstm_model_forward.6
= control target key start
LH: loop header
LB: loop body
LE: loop exit
PB: predicated region body
PF: predicated region fallthrough
CT: control target
= control target key end

     0   :  { %vm33_vm0 = vcmask 261120   ;;  %s319_s1 = inlined_call_operand.vmem [shape: f32[32,128], index: 1, kind: input, shape index: {}]   ;;  %s320_s0 = inlined_call_operand.vmem [shape: f32[64,32], index: 0, kind: input, shape index: {}]   ;;  %s321_s2 = inlined_call_operand.vmem [shape: f32[1,128], index: 2, kind: input, shape index: {}]   ;;  %s322_s3 = inlined_call_operand.vmem [shape: f32[64,128], index: 3, kind: output, shape index: {}]  }
   0x1   :  { %v22_v0 = vld [vmem:[%s319_s1] sm:$0xff]  ;;  %v23_v1 = vld [vmem:[%s319_s1 + $0x8] sm:$0xff]  ;;  %v24_v2 = vld [vmem:[%s319_s1 + $0x10] sm:$0xff] }
   0x2   :  { %v216_v3 = vpack.c.bf16 %v23_v1, %v22_v0  ;;  %v25_v4 = vld [vmem:[%s319_s1 + $0x18] sm:$0xff]  ;;  %v14_v5 = vld [vmem:[%s320_s0] sm:$0xff]  ;;  %v15_v8 = vld [vmem:[%s320_s0 + $0x8] sm:$0xff] }
   0x3   :  { %v18_v6 = vld [vmem:[%s320_s0 + $0x20] sm:$0xff]  ;;  %v220_v7 = vpack.c.bf16 %v25_v4, %v24_v2  ;;  %204 = vmatprep.mubr.msk.f32.mxu0 %vm33_vm0, %v14_v5  ;;  %v19_v9 = vld [vmem:[%s320_s0 + $0x28] sm:$0xff]  ;;  %v16_v10 = vld [vmem:[%s320_s0 + $0x10] sm:$0xff] }
   0x4   :  { %210 = vmatprep.mubr.msk.f32.mxu1 %vm33_vm0, %v18_v6  ;;  %217 = vmatprep.subr.bf16.mxu0 %v216_v3  ;;  %v20_v11 = vld [vmem:[%s320_s0 + $0x30] sm:$0xff]  ;;  %v17_v12 = vld [vmem:[%s320_s0 + $0x18] sm:$0xff]  ;;  %v175_v14 = vld [vmem:[%s321_s2] ss:$0 sm:$0xff] }
   0x5   :  { %224 = vmatprep.subr.bf16.mxu1 %v216_v3  ;;  %219 = vmatpush3.bf16.msra.mxu0 %v216_v3  ;;  %v21_v13 = vld [vmem:[%s320_s0 + $0x38] sm:$0xff] }
   0x6   :  { %226 = vmatpush3.bf16.msra.mxu1 %v216_v3  ;;  %221 = vmatprep.subr.bf16.mxu0 %v220_v7 }
   0x7   :  { %225 = vmatprep.subr.bf16.mxu1 %v220_v7 }
   0x9   :  { %223 = vmatpush3.bf16.msra.mxu0 %v220_v7 }
   0xa   :  { %227 = vmatpush3.bf16.msra.mxu1 %v220_v7 }
   0xc   :  { %205 = vmatmul.mubr.msk.f32.vlgmr.msra.gmra.mrb[0].mxu0 %vm33_vm0, %v15_v8 }
   0xd   :  { %211 = vmatmul.mubr.msk.f32.vlgmr.msra.gmra.mrb[0].mxu1 %vm33_vm0, %v19_v9  ;;  %207 = vmatprep.mubr.msk.f32.mxu0 %vm33_vm0, %v16_v10 }
   0xe   :  { %213 = vmatprep.mubr.msk.f32.mxu1 %vm33_vm0, %v20_v11 }
  0x10   :  { %208 = vmatmul.mubr.msk.f32.gmra.mrb[2].mxu0 %vm33_vm0, %v17_v12 }
  0x11   :  { %214 = vmatmul.mubr.msk.f32.gmra.mrb[2].mxu1 %vm33_vm0, %v21_v13 }
  0xdf   :  { %v206_v15 = vpop.f32.mrb[0].mxu0 }
  0xe0   :  { %v212_v16 = vpop.f32.mrb[0].mxu1  ;;  %v130_v17 = vadd.f32 %v206_v15, %v175_v14  ;;  %v124_v19 = vpop.f32.mrb[1].mxu0 }
  0xe1   :  { %v150_v18 = vadd.f32 %v212_v16, %v175_v14  ;;  %v144_v20 = vpop.f32.mrb[1].mxu1  ;;  %v125_v21 = vadd.f32 %v175_v14, %v124_v19 }
  0xe2   :  { %v145_v22 = vadd.f32 %v175_v14, %v144_v20  ;;  %164 = vst [vmem:[%s322_s3 + $0x8] sm:$0xff] %v130_v17 }
  0xe3   :  { %168 = vst [vmem:[%s322_s3 + $0x28] sm:$0xff] %v150_v18  ;;  %163 = vst [vmem:[%s322_s3] sm:$0xff] %v125_v21  ;;  %v209_v23 = vpop.f32.mrb[2].mxu0 }
  0xe4   :  { %167 = vst [vmem:[%s322_s3 + $0x20] sm:$0xff] %v145_v22  ;;  %v215_v24 = vpop.f32.mrb[2].mxu1  ;;  %v140_v25 = vadd.f32 %v209_v23, %v175_v14  ;;  %v134_v27 = vpop.f32.mrb[3].mxu0 }
  0xe5   :  { %v160_v26 = vadd.f32 %v215_v24, %v175_v14  ;;  %v154_v28 = vpop.f32.mrb[3].mxu1  ;;  %v135_v29 = vadd.f32 %v175_v14, %v134_v27 }
  0xe6   :  { %v155_v30 = vadd.f32 %v175_v14, %v154_v28  ;;  %166 = vst [vmem:[%s322_s3 + $0x18] sm:$0xff] %v140_v25 }
  0xe7   :  { %170 = vst [vmem:[%s322_s3 + $0x38] sm:$0xff] %v160_v26  ;;  %165 = vst [vmem:[%s322_s3 + $0x10] sm:$0xff] %v135_v29 }
  0xe8   :  { %169 = vst [vmem:[%s322_s3 + $0x30] sm:$0xff] %v155_v30 }

// kernel: lstm_model_forward.7
= control target key start
LH: loop header
LB: loop body
LE: loop exit
PB: predicated region body
PF: predicated region fallthrough
CT: control target
= control target key end

     0   :  { %v1244_v0 = vmov 0.0|0.0   ;;  %vm1245_vm0 = vmmov 0   ;;  %v1246_v4 = vmov 0.0   ;;  %vm32_vm1 = vcmask 261120   ;;  %s1247_s7 = smov 64   ;;  %s1248_s10 = smov 32   ;;  %s1442_s1 = inlined_call_operand.vmem [shape: f32[32,128], index: 1, kind: input, shape index: {}]   ;;  %s1443_s2 = inlined_call_operand.vmem [shape: f32[8,32], index: 2, kind: input, shape index: {}]   ;;  %s1444_s0 = inlined_call_operand.vmem [shape: f32[8,8,128], index: 0, kind: input, shape index: {}]   ;;  %s1445_s3 = inlined_call_operand.vmem [shape: f32[8,32], index: 3, kind: input, shape index: {}]   ;;  %s1446_s4 = inlined_call_operand.vmem [shape: f32[32,1], index: 4, kind: input, shape index: {}]   ;;  %s1447_s5 = inlined_call_operand.<no memory space> [shape: f32[1,1], index: 5, kind: input, shape index: {}]   ;;  %s1448_s6 = inlined_call_operand.vmem [shape: f32[8,1], index: 6, kind: output, shape index: {}]  }
   0x1   :  { %1117 = vmatprep.subr.bf16.mxu0 %v1244_v0  ;;  %v28_v1 = vld [vmem:[%s1442_s1] sm:$0xff]  ;;  %v29_v2 = vld [vmem:[%s1442_s1 + $0x8] sm:$0xff]  ;;  %v30_v3 = vld [vmem:[%s1442_s1 + $0x10] sm:$0xff]  ;;  %1026 = vmatprep.mubr.msk.f32.mxu0 %vm1245_vm0, %v1246_v4  ;;  %vm941_vm2 = vcmask 7168  }
   0x2   :  { %v1296_v5 = vpack.c.bf16 %v29_v2, %v28_v1  ;;  %v31_v6 = vld [vmem:[%s1442_s1 + $0x18] sm:$0xff]  ;;  %1123 = vmatprep.subr.bf16.mxu1 %v1244_v0  ;;  %1037 = vmatprep.mubr.msk.f32.mxu1 %vm1245_vm0, %v1246_v4  ;;  %v25_v8 = vld [vmem:[%s1443_s2] sm:$0xff]  ;;  %v949_v29 = vld [vmem:[%s1444_s0 + $0x8] sm:$0xff] }
   0x3   :  { %v1305_v7 = vpack.c.bf16 %v31_v6, %v30_v3  ;;  %v27_v9 = vld [vmem:[%s1444_s0] sm:$0xff]  ;;  %v952_v47 = vld [vmem:[%s1444_s0 + $0x10] sm:$0xff]  ;;  %v955_v2 = vld [vmem:[%s1444_s0 + $0x18] sm:$0xff] }
   0x4   :  { %1119 = vmatpush3.bf16.msra.mxu0 %v1296_v5  ;;  %1125 = vmatpush3.bf16.msra.mxu1 %v1296_v5  ;;  %v26_v14 = vld [vmem:[%s1445_s3] sm:$0xff] }
   0x5   :  { %1120 = vmatprep.subr.bf16.mxu0 %v1244_v0  ;;  %1126 = vmatprep.subr.bf16.mxu1 %v1244_v0 }
   0x8   :  { %1122 = vmatpush3.bf16.msra.mxu0 %v1305_v7  ;;  %1128 = vmatpush3.bf16.msra.mxu1 %v1305_v7 }
   0x9   :  { %1129 = vmatprep.subr.bf16.mxu0 %v1244_v0  ;;  %1135 = vmatprep.subr.bf16.mxu1 %v1244_v0 }
   0xb   :  { %1027 = vmatmul.mubr.msk.f32.vlgmr.msra.gmra.mrb[0].mxu0 %vm32_vm1, %v25_v8 }
   0xc   :  { %1131 = vmatpush3.bf16.msra.mxu0 %v1296_v5  ;;  %1048 = vmatprep.mubr.msk.f32.mxu0 %vm1245_vm0, %v1246_v4 }
   0xd   :  { %1132 = vmatprep.subr.bf16.mxu0 %v1244_v0 }
  0x10   :  { %1134 = vmatpush3.bf16.msra.mxu0 %v1305_v7 }
  0x11   :  { %1141 = vmatprep.subr.bf16.mxu0 %v1244_v0 }
  0xde   :  { %v102_v10 = vpop.f32.mrb[0].mxu0 }
  0xdf   :  { %v106_v11 = vadd.f32 %v102_v10, %v27_v9  ;;  %v1028_v12 = vpop.f32.mrb[1].mxu0 }
  0xe1   :  { %1176 = vtanh.f32 %v106_v11  ;;  %v948_v15 = vmul.f32 -1.442695, %v106_v11 }
  0xe3   :  { %1178 = vpow2.f32 %v948_v15 }
  0xeb   :  { %v1177_v13 = vpop.eup %1176 }
  0xec   :  { %120 = vrot.lane.b32.xlu0 %v1177_v13, %s1247_s7 }
  0xed   :  { %v1179_v16 = vpop.eup %1178 }
  0xee   :  { %v110_v17 = vadd.f32 1.0, %v1179_v16 }
  0xf0   :  { %115 = vrot.lane.b32.xlu0 %v26_v14, %s1248_s10  ;;  %1180 = vrcp.f32 %v110_v17 }
  0xfa   :  { %v1181_v18 = vpop.eup %1180 }
 0x15e   :  { %v121_v19 = vpop.permute.xlu0 %120 }
 0x15f   :  { %v123_v20 = vmul.f32 %v1181_v18, %v121_v19 }
 0x161   :  { %125 = vrot.lane.b32.xlu1 %v123_v20, %s1248_s10 }
 0x162   :  { %v116_v21 = vpop.permute.xlu0 %115 }
 0x163   :  { %v118_v22 = vmul.f32 %v1181_v18, %v116_v21 }
 0x1d3   :  { %v126_v23 = vpop.permute.xlu1 %125 }
 0x1d4   :  { %v128_v24 = vadd.f32 %v126_v23, %v118_v22  ;;  %v958_v23 = vld [vmem:[%s1444_s0 + $0x20] sm:$0xff] }
 0x1d6   :  { %1182 = vtanh.f32 %v128_v24 }
 0x1e0   :  { %v1183_v25 = vpop.eup %1182 }
 0x1e1   :  { %131 = vrot.lane.b32.xlu1 %v1183_v25, %s1247_s7 }
 0x253   :  { %v132_v26 = vpop.permute.xlu1 %131 }
 0x254   :  { %v134_v27 = vmul.f32 %v1181_v18, %v132_v26 }
 0x256   :  { %138 = vrot.lane.b32.xlu0 %v134_v27, %s1248_s10 }
 0x2c8   :  { %v139_v28 = vpop.permute.xlu0 %138 }
 0x2c9   :  { %1038 = vmatmul.mubr.msk.f32.vlgmr.msra.gmra.mrb[0].mxu1 %vm32_vm1, %v139_v28 }
 0x2ca   :  { %1137 = vmatpush3.bf16.msra.mxu1 %v1296_v5  ;;  %1059 = vmatprep.mubr.msk.f32.mxu1 %vm1245_vm0, %v1246_v4 }
 0x2cb   :  { %1138 = vmatprep.subr.bf16.mxu1 %v1244_v0 }
 0x2ce   :  { %1140 = vmatpush3.bf16.msra.mxu1 %v1305_v7 }
 0x2cf   :  { %1147 = vmatprep.subr.bf16.mxu1 %v1244_v0 }
 0x39c   :  { %v208_v30 = vpop.f32.mrb[0].mxu1 }
 0x39d   :  { %v212_v31 = vadd.f32 %v949_v29, %v208_v30  ;;  %v1039_v32 = vpop.f32.mrb[1].mxu1 }
 0x39f   :  { %1184 = vtanh.f32 %v212_v31  ;;  %v951_v34 = vmul.f32 -1.442695, %v212_v31 }
 0x3a1   :  { %1186 = vpow2.f32 %v951_v34 }
 0x3a9   :  { %v1185_v33 = vpop.eup %1184 }
 0x3aa   :  { %222 = vrot.lane.b32.xlu1 %v1185_v33, %s1247_s7 }
 0x3ab   :  { %v1187_v35 = vpop.eup %1186 }
 0x3ac   :  { %v216_v36 = vadd.f32 1.0, %v1187_v35 }
 0x3ae   :  { %1188 = vrcp.f32 %v216_v36 }
 0x3b8   :  { %v1189_v37 = vpop.eup %1188 }
 0x3b9   :  { %v220_v40 = vmul.f32 %v1189_v37, %v128_v24 }
 0x41c   :  { %v223_v38 = vpop.permute.xlu1 %222 }
 0x41d   :  { %v225_v39 = vmul.f32 %v1189_v37, %v223_v38 }
 0x41f   :  { %227 = vrot.lane.b32.xlu0 %v225_v39, %s1248_s10 }
 0x491   :  { %v228_v41 = vpop.permute.xlu0 %227 }
 0x492   :  { %v230_v42 = vadd.f32 %v228_v41, %v220_v40  ;;  %v961_v41 = vld [vmem:[%s1444_s0 + $0x28] sm:$0xff] }
 0x494   :  { %1190 = vtanh.f32 %v230_v42 }
 0x49e   :  { %v1191_v43 = vpop.eup %1190 }
 0x49f   :  { %233 = vrot.lane.b32.xlu1 %v1191_v43, %s1247_s7 }
 0x511   :  { %v234_v44 = vpop.permute.xlu1 %233 }
 0x512   :  { %v236_v45 = vmul.f32 %v1189_v37, %v234_v44 }
 0x514   :  { %240 = vrot.lane.b32.xlu0 %v236_v45, %s1248_s10 }
 0x586   :  { %v241_v46 = vpop.permute.xlu0 %240 }
 0x587   :  { %1049 = vmatmul.mubr.msk.f32.vlgmr.msra.gmra.mrb[2].mxu0 %vm32_vm1, %v241_v46 }
 0x588   :  { %1143 = vmatpush3.bf16.msra.mxu0 %v1296_v5  ;;  %1070 = vmatprep.mubr.msk.f32.mxu0 %vm1245_vm0, %v1246_v4 }
 0x589   :  { %1144 = vmatprep.subr.bf16.mxu0 %v1244_v0 }
 0x58c   :  { %1146 = vmatpush3.bf16.msra.mxu0 %v1305_v7 }
 0x58d   :  { %1153 = vmatprep.subr.bf16.mxu0 %v1244_v0 }
 0x65a   :  { %v310_v48 = vpop.f32.mrb[2].mxu0 }
 0x65b   :  { %v314_v49 = vadd.f32 %v952_v47, %v310_v48  ;;  %v1050_v50 = vpop.f32.mrb[3].mxu0 }
 0x65d   :  { %1192 = vtanh.f32 %v314_v49  ;;  %v954_v52 = vmul.f32 -1.442695, %v314_v49 }
 0x65f   :  { %1194 = vpow2.f32 %v954_v52 }
 0x667   :  { %v1193_v51 = vpop.eup %1192 }
 0x668   :  { %324 = vrot.lane.b32.xlu1 %v1193_v51, %s1247_s7 }
 0x669   :  { %v1195_v53 = vpop.eup %1194 }
 0x66a   :  { %v318_v54 = vadd.f32 1.0, %v1195_v53 }
 0x66c   :  { %1196 = vrcp.f32 %v318_v54 }
 0x676   :  { %v1197_v55 = vpop.eup %1196 }
 0x677   :  { %v322_v58 = vmul.f32 %v1197_v55, %v230_v42 }
 0x6da   :  { %v325_v56 = vpop.permute.xlu1 %324 }
 0x6db   :  { %v327_v57 = vmul.f32 %v1197_v55, %v325_v56 }
 0x6dd   :  { %329 = vrot.lane.b32.xlu0 %v327_v57, %s1248_s10  ;;  %v964_v57 = vld [vmem:[%s1444_s0 + $0x30] sm:$0xff] }
 0x74f   :  { %v330_v59 = vpop.permute.xlu0 %329 }
 0x750   :  { %v332_v60 = vadd.f32 %v330_v59, %v322_v58 }
 0x752   :  { %1198 = vtanh.f32 %v332_v60 }
 0x75c   :  { %v1199_v61 = vpop.eup %1198 }
 0x75d   :  { %335 = vrot.lane.b32.xlu1 %v1199_v61, %s1247_s7 }
 0x7cf   :  { %v336_v62 = vpop.permute.xlu1 %335 }
 0x7d0   :  { %v338_v63 = vmul.f32 %v1197_v55, %v336_v62 }
 0x7d2   :  { %342 = vrot.lane.b32.xlu0 %v338_v63, %s1248_s10 }
 0x844   :  { %v343_v1 = vpop.permute.xlu0 %342 }
 0x845   :  { %1060 = vmatmul.mubr.msk.f32.vlgmr.msra.gmra.mrb[2].mxu1 %vm32_vm1, %v343_v1 }
 0x846   :  { %1149 = vmatpush3.bf16.msra.mxu1 %v1296_v5  ;;  %1081 = vmatprep.mubr.msk.f32.mxu1 %vm1245_vm0, %v1246_v4 }
 0x847   :  { %1150 = vmatprep.subr.bf16.mxu1 %v1244_v0 }
 0x84a   :  { %1152 = vmatpush3.bf16.msra.mxu1 %v1305_v7 }
 0x84b   :  { %1159 = vmatprep.subr.bf16.mxu1 %v1244_v0 }
 0x918   :  { %v412_v3 = vpop.f32.mrb[2].mxu1 }
 0x919   :  { %v416_v6 = vadd.f32 %v955_v2, %v412_v3  ;;  %v1061_v8 = vpop.f32.mrb[3].mxu1 }
 0x91b   :  { %1200 = vtanh.f32 %v416_v6  ;;  %v957_v10 = vmul.f32 -1.442695, %v416_v6 }
 0x91d   :  { %1202 = vpow2.f32 %v957_v10 }
 0x925   :  { %v1201_v9 = vpop.eup %1200 }
 0x926   :  { %426 = vrot.lane.b32.xlu1 %v1201_v9, %s1247_s7 }
 0x927   :  { %v1203_v11 = vpop.eup %1202 }
 0x928   :  { %v420_v12 = vadd.f32 1.0, %v1203_v11 }
 0x92a   :  { %1204 = vrcp.f32 %v420_v12 }
 0x934   :  { %v1205_v13 = vpop.eup %1204 }
 0x935   :  { %v424_v16 = vmul.f32 %v1205_v13, %v332_v60 }
 0x998   :  { %v427_v14 = vpop.permute.xlu1 %426 }
 0x999   :  { %v429_v15 = vmul.f32 %v1205_v13, %v427_v14  ;;  %v967_v14 = vld [vmem:[%s1444_s0 + $0x38] sm:$0xff] }
 0x99b   :  { %431 = vrot.lane.b32.xlu0 %v429_v15, %s1248_s10 }
 0xa0d   :  { %v432_v17 = vpop.permute.xlu0 %431 }
 0xa0e   :  { %v434_v18 = vadd.f32 %v432_v17, %v424_v16 }
 0xa10   :  { %1206 = vtanh.f32 %v434_v18 }
 0xa1a   :  { %v1207_v19 = vpop.eup %1206 }
 0xa1b   :  { %437 = vrot.lane.b32.xlu1 %v1207_v19, %s1247_s7 }
 0xa8d   :  { %v438_v20 = vpop.permute.xlu1 %437 }
 0xa8e   :  { %v440_v21 = vmul.f32 %v1205_v13, %v438_v20 }
 0xa90   :  { %444 = vrot.lane.b32.xlu0 %v440_v21, %s1248_s10 }
 0xb02   :  { %v445_v22 = vpop.permute.xlu0 %444 }
 0xb03   :  { %1071 = vmatmul.mubr.msk.f32.vlgmr.msra.gmra.mrb[4].mxu0 %vm32_vm1, %v445_v22 }
 0xb04   :  { %1155 = vmatpush3.bf16.msra.mxu0 %v1296_v5  ;;  %1092 = vmatprep.mubr.msk.f32.mxu0 %vm1245_vm0, %v1246_v4 }
 0xb05   :  { %1156 = vmatprep.subr.bf16.mxu0 %v1244_v0 }
 0xb08   :  { %1158 = vmatpush3.bf16.msra.mxu0 %v1305_v7 }
 0xb09   :  { %1165 = vmatprep.subr.bf16.mxu0 %v1244_v0 }
 0xbd6   :  { %v514_v24 = vpop.f32.mrb[4].mxu0 }
 0xbd7   :  { %v518_v25 = vadd.f32 %v958_v23, %v514_v24  ;;  %v1072_v26 = vpop.f32.mrb[5].mxu0 }
 0xbd9   :  { %1208 = vtanh.f32 %v518_v25  ;;  %v960_v28 = vmul.f32 -1.442695, %v518_v25 }
 0xbdb   :  { %1210 = vpow2.f32 %v960_v28  ;;  %v849_v28 = vld [vmem:[%s1446_s4] sm:$0xff] }
 0xbe3   :  { %v1209_v27 = vpop.eup %1208 }
 0xbe4   :  { %528 = vrot.lane.b32.xlu1 %v1209_v27, %s1247_s7 }
 0xbe5   :  { %v1211_v29 = vpop.eup %1210 }
 0xbe6   :  { %v522_v30 = vadd.f32 1.0, %v1211_v29  ;;  %v850_v29 = vld [vmem:[%s1446_s4 + $0x8] sm:$0xff] }
 0xbe8   :  { %1212 = vrcp.f32 %v522_v30  ;;  %v851_v30 = vld [vmem:[%s1446_s4 + $0x10] sm:$0xff] }
 0xbf2   :  { %v1213_v31 = vpop.eup %1212 }
 0xbf3   :  { %v526_v34 = vmul.f32 %v1213_v31, %v434_v18 }
 0xc56   :  { %v529_v32 = vpop.permute.xlu1 %528 }
 0xc57   :  { %v531_v33 = vmul.f32 %v1213_v31, %v529_v32  ;;  %v852_v32 = vld [vmem:[%s1446_s4 + $0x18] sm:$0xff] }
 0xc59   :  { %533 = vrot.lane.b32.xlu0 %v531_v33, %s1248_s10  ;;  %v1169_v33 = vpack.c.bf16 %v852_v32, %v851_v30 }
 0xccb   :  { %v534_v35 = vpop.permute.xlu0 %533 }
 0xccc   :  { %v536_v36 = vadd.f32 %v534_v35, %v526_v34  ;;  %v11_v35 = vstv %s1447_s5 }
 0xccd   :  { %12 = vst [vmem:[#allocation2] sm:$0x1] %v11_v35 }
 0xcce   :  { %1214 = vtanh.f32 %v536_v36 }
 0xcd8   :  { %v1215_v37 = vpop.eup %1214 }
 0xcd9   :  { %539 = vrot.lane.b32.xlu1 %v1215_v37, %s1247_s7 }
 0xd4b   :  { %v540_v38 = vpop.permute.xlu1 %539 }
 0xd4c   :  { %v542_v39 = vmul.f32 %v1213_v31, %v540_v38  ;;  %v1166_v31 = vpack.c.bf16 %v850_v29, %v849_v28 }
 0xd4e   :  { %546 = vrot.lane.b32.xlu0 %v542_v39, %s1248_s10  ;;  %v970_v39 = vld [vmem:[#allocation2] ss:$0 sm:$0xff] }
 0xdc0   :  { %v547_v40 = vpop.permute.xlu0 %546 }
 0xdc1   :  { %1082 = vmatmul.mubr.msk.f32.vlgmr.msra.gmra.mrb[4].mxu1 %vm32_vm1, %v547_v40 }
 0xdc2   :  { %1161 = vmatpush3.bf16.msra.mxu1 %v1296_v5  ;;  %1103 = vmatprep.mubr.msk.f32.mxu1 %vm1245_vm0, %v1246_v4 }
 0xdc3   :  { %1162 = vmatprep.subr.bf16.mxu1 %v1244_v0 }
 0xdc6   :  { %1164 = vmatpush3.bf16.msra.mxu1 %v1305_v7 }
 0xe94   :  { %v616_v42 = vpop.f32.mrb[4].mxu1 }
 0xe95   :  { %v620_v43 = vadd.f32 %v961_v41, %v616_v42  ;;  %v1083_v44 = vpop.f32.mrb[5].mxu1 }
 0xe97   :  { %1216 = vtanh.f32 %v620_v43  ;;  %v963_v46 = vmul.f32 -1.442695, %v620_v43 }
 0xe99   :  { %1218 = vpow2.f32 %v963_v46 }
 0xea1   :  { %v1217_v45 = vpop.eup %1216 }
 0xea2   :  { %630 = vrot.lane.b32.xlu1 %v1217_v45, %s1247_s7 }
 0xea3   :  { %v1219_v5 = vpop.eup %1218 }
 0xea4   :  { %v624_v47 = vadd.f32 1.0, %v1219_v5 }
 0xea6   :  { %1220 = vrcp.f32 %v624_v47 }
 0xeb0   :  { %v1221_v48 = vpop.eup %1220 }
 0xeb1   :  { %v628_v7 = vmul.f32 %v1221_v48, %v536_v36 }
 0xf14   :  { %v631_v49 = vpop.permute.xlu1 %630 }
 0xf15   :  { %v633_v50 = vmul.f32 %v1221_v48, %v631_v49 }
 0xf17   :  { %635 = vrot.lane.b32.xlu0 %v633_v50, %s1248_s10 }
 0xf89   :  { %v636_v51 = vpop.permute.xlu0 %635 }
 0xf8a   :  { %v638_v52 = vadd.f32 %v636_v51, %v628_v7 }
 0xf8c   :  { %1222 = vtanh.f32 %v638_v52 }
 0xf96   :  { %v1223_v53 = vpop.eup %1222 }
 0xf97   :  { %641 = vrot.lane.b32.xlu1 %v1223_v53, %s1247_s7 }
0x1009   :  { %v642_v54 = vpop.permute.xlu1 %641 }
0x100a   :  { %v644_v55 = vmul.f32 %v1221_v48, %v642_v54 }
0x100c   :  { %648 = vrot.lane.b32.xlu0 %v644_v55, %s1248_s10 }
0x107e   :  { %v649_v56 = vpop.permute.xlu0 %648 }
0x107f   :  { %1093 = vmatmul.mubr.msk.f32.vlgmr.msra.gmra.mrb[6].mxu0 %vm32_vm1, %v649_v56 }
0x1080   :  { %1114 = vmatprep.mubr.msk.f32.mxu0 %vm1245_vm0, %v1246_v4  ;;  %1167 = vmatpush3.bf16.msra.mxu0 %v1166_v31 }
0x1081   :  { %1168 = vmatprep.subr.bf16.mxu0 %v1244_v0 }
0x1084   :  { %1170 = vmatpush3.bf16.msra.mxu0 %v1169_v33 }
0x1152   :  { %v718_v58 = vpop.f32.mrb[6].mxu0 }
0x1153   :  { %v722_v59 = vadd.f32 %v964_v57, %v718_v58  ;;  %v1094_v60 = vpop.f32.mrb[7].mxu0 }
0x1155   :  { %1224 = vtanh.f32 %v722_v59  ;;  %v966_v62 = vmul.f32 -1.442695, %v722_v59 }
0x1157   :  { %1226 = vpow2.f32 %v966_v62 }
0x115f   :  { %v1225_v61 = vpop.eup %1224 }
0x1160   :  { %732 = vrot.lane.b32.xlu1 %v1225_v61, %s1247_s7 }
0x1161   :  { %v1227_v63 = vpop.eup %1226 }
0x1162   :  { %v726_v1 = vadd.f32 1.0, %v1227_v63 }
0x1164   :  { %1228 = vrcp.f32 %v726_v1 }
0x116e   :  { %v1229_v2 = vpop.eup %1228 }
0x116f   :  { %v730_v4 = vmul.f32 %v1229_v2, %v638_v52 }
0x11d2   :  { %v733_v3 = vpop.permute.xlu1 %732 }
0x11d3   :  { %v735_v6 = vmul.f32 %v1229_v2, %v733_v3 }
0x11d5   :  { %737 = vrot.lane.b32.xlu0 %v735_v6, %s1248_s10 }
0x1247   :  { %v738_v8 = vpop.permute.xlu0 %737 }
0x1248   :  { %v740_v9 = vadd.f32 %v738_v8, %v730_v4 }
0x124a   :  { %1230 = vtanh.f32 %v740_v9 }
0x1254   :  { %v1231_v10 = vpop.eup %1230 }
0x1255   :  { %743 = vrot.lane.b32.xlu1 %v1231_v10, %s1247_s7 }
0x12c7   :  { %v744_v11 = vpop.permute.xlu1 %743 }
0x12c8   :  { %v746_v12 = vmul.f32 %v1229_v2, %v744_v11 }
0x12ca   :  { %750 = vrot.lane.b32.xlu0 %v746_v12, %s1248_s10 }
0x133c   :  { %v751_v13 = vpop.permute.xlu0 %750 }
0x133d   :  { %1104 = vmatmul.mubr.msk.f32.vlgmr.msra.gmra.mrb[6].mxu1 %vm32_vm1, %v751_v13 }
0x1410   :  { %v820_v15 = vpop.f32.mrb[6].mxu1 }
0x1411   :  { %v824_v16 = vadd.f32 %v967_v14, %v820_v15  ;;  %v1105_v17 = vpop.f32.mrb[7].mxu1 }
0x1413   :  { %1232 = vtanh.f32 %v824_v16  ;;  %v969_v19 = vmul.f32 -1.442695, %v824_v16 }
0x1415   :  { %1234 = vpow2.f32 %v969_v19 }
0x141d   :  { %v1233_v18 = vpop.eup %1232 }
0x141e   :  { %834 = vrot.lane.b32.xlu1 %v1233_v18, %s1247_s7 }
0x141f   :  { %v1235_v20 = vpop.eup %1234 }
0x1420   :  { %v828_v21 = vadd.f32 1.0, %v1235_v20 }
0x1422   :  { %1236 = vrcp.f32 %v828_v21 }
0x142c   :  { %v1237_v22 = vpop.eup %1236 }
0x142d   :  { %v832_v25 = vmul.f32 %v1237_v22, %v740_v9 }
0x1490   :  { %v835_v23 = vpop.permute.xlu1 %834 }
0x1491   :  { %v837_v24 = vmul.f32 %v1237_v22, %v835_v23 }
0x1493   :  { %839 = vrot.lane.b32.xlu0 %v837_v24, %s1248_s10 }
0x1505   :  { %v840_v26 = vpop.permute.xlu0 %839 }
0x1506   :  { %v842_v27 = vadd.f32 %v840_v26, %v832_v25 }
0x1508   :  { %1238 = vtanh.f32 %v842_v27 }
0x1512   :  { %v1239_v34 = vpop.eup %1238 }
0x1513   :  { %845 = vrot.lane.b32.xlu1 %v1239_v34, %s1247_s7 }
0x1585   :  { %v846_v36 = vpop.permute.xlu1 %845 }
0x1586   :  { %v848_v37 = vmul.f32 %v1237_v22, %v846_v36 }
0x1588   :  { %861 = vrot.lane.b32.xlu0 %v848_v37, %s1248_s10 }
0x15fa   :  { %v862_v38 = vpop.permute.xlu0 %861 }
0x15fb   :  { %1115 = vmatmul.mubr.msk.f32.vlgmr.msra.gmra.mrb[8].mxu0 %vm32_vm1, %v862_v38 }
0x16ce   :  { %v931_v40 = vpop.f32.mrb[8].mxu0 }
0x16cf   :  { %v932_v41 = vadd.f32 %v970_v39, %v931_v40  ;;  %v1116_v0 = vpop.f32.mrb[9].mxu0 }
0x16d1   :  { %v972_v42 = vmul.f32 -1.442695, %v932_v41 }
0x16d3   :  { %1240 = vpow2.f32 %v972_v42 }
0x16dd   :  { %v1241_v43 = vpop.eup %1240 }
0x16de   :  { %v938_v44 = vadd.f32 1.0, %v1241_v43 }
0x16e0   :  { %1242 = vrcp.f32 %v938_v44 }
0x16ea   :  { %v1243_v45 = vpop.eup %1242 }
0x16eb   :  { %942 = vst.msk [vmem:[%s1448_s6] sm:$0xff] %vm941_vm2, %v1243_v45 }

// kernel: lstm_model_forward.5
= control target key start
LH: loop header
LB: loop body
LE: loop exit
PB: predicated region body
PF: predicated region fallthrough
CT: control target
= control target key end

     0   :  { %v1174_v0 = vmov 0.0|0.0   ;;  %vm1175_vm0 = vmmov 0   ;;  %v1176_v4 = vmov 0.0   ;;  %vm24_vm1 = vcmask 261120   ;;  %s1177_s25 = smov 64   ;;  %s1178_s28 = smov 32   ;;  %s1371_s1 = inlined_call_operand.vmem [shape: f32[32,128], index: 1, kind: input, shape index: {}]   ;;  %s1372_s2 = inlined_call_operand.vmem [shape: f32[8,32], index: 2, kind: input, shape index: {}]   ;;  %s1373_s0 = inlined_call_operand.vmem [shape: f32[8,8,128], index: 0, kind: input, shape index: {}]   ;;  %s1374_s3 = inlined_call_operand.vmem [shape: f32[8,32], index: 3, kind: input, shape index: {}]   ;;  %s1375_s4 = inlined_call_operand.vmem [shape: f32[8,8,32], index: 4, kind: output, shape index: {}]  }
   0x1   :  { %1057 = vmatprep.subr.bf16.mxu0 %v1174_v0  ;;  %v20_v1 = vld [vmem:[%s1371_s1] sm:$0xff]  ;;  %v21_v2 = vld [vmem:[%s1371_s1 + $0x8] sm:$0xff]  ;;  %v22_v3 = vld [vmem:[%s1371_s1 + $0x10] sm:$0xff]  ;;  %977 = vmatprep.mubr.msk.f32.mxu0 %vm1175_vm0, %v1176_v4 }
   0x2   :  { %v1216_v5 = vpack.c.bf16 %v21_v2, %v20_v1  ;;  %v23_v6 = vld [vmem:[%s1371_s1 + $0x18] sm:$0xff]  ;;  %1063 = vmatprep.subr.bf16.mxu1 %v1174_v0  ;;  %988 = vmatprep.mubr.msk.f32.mxu1 %vm1175_vm0, %v1176_v4  ;;  %v17_v8 = vld [vmem:[%s1372_s2] sm:$0xff]  ;;  %v901_v29 = vld [vmem:[%s1373_s0 + $0x8] sm:$0xff] }
   0x3   :  { %v1225_v7 = vpack.c.bf16 %v23_v6, %v22_v3  ;;  %v19_v9 = vld [vmem:[%s1373_s0] sm:$0xff]  ;;  %v905_v47 = vld [vmem:[%s1373_s0 + $0x10] sm:$0xff]  ;;  %v909_v2 = vld [vmem:[%s1373_s0 + $0x18] sm:$0xff] }
   0x4   :  { %1059 = vmatpush3.bf16.msra.mxu0 %v1216_v5  ;;  %1065 = vmatpush3.bf16.msra.mxu1 %v1216_v5  ;;  %v18_v14 = vld [vmem:[%s1374_s3] sm:$0xff] }
   0x5   :  { %1060 = vmatprep.subr.bf16.mxu0 %v1174_v0  ;;  %1066 = vmatprep.subr.bf16.mxu1 %v1174_v0 }
   0x8   :  { %1062 = vmatpush3.bf16.msra.mxu0 %v1225_v7  ;;  %1068 = vmatpush3.bf16.msra.mxu1 %v1225_v7 }
   0x9   :  { %1069 = vmatprep.subr.bf16.mxu0 %v1174_v0  ;;  %1075 = vmatprep.subr.bf16.mxu1 %v1174_v0 }
   0xb   :  { %978 = vmatmul.mubr.msk.f32.vlgmr.msra.gmra.mrb[0].mxu0 %vm24_vm1, %v17_v8 }
   0xc   :  { %1071 = vmatpush3.bf16.msra.mxu0 %v1216_v5  ;;  %999 = vmatprep.mubr.msk.f32.mxu0 %vm1175_vm0, %v1176_v4 }
   0xd   :  { %1072 = vmatprep.subr.bf16.mxu0 %v1174_v0 }
  0x10   :  { %1074 = vmatpush3.bf16.msra.mxu0 %v1225_v7 }
  0x11   :  { %1081 = vmatprep.subr.bf16.mxu0 %v1174_v0 }
  0xde   :  { %v94_v10 = vpop.f32.mrb[0].mxu0 }
  0xdf   :  { %v98_v11 = vadd.f32 %v94_v10, %v19_v9  ;;  %v979_v12 = vpop.f32.mrb[1].mxu0 }
  0xe1   :  { %1110 = vtanh.f32 %v98_v11  ;;  %v900_v15 = vmul.f32 -1.442695, %v98_v11 }
  0xe3   :  { %1112 = vpow2.f32 %v900_v15 }
  0xeb   :  { %v1111_v13 = vpop.eup %1110 }
  0xec   :  { %112 = vrot.lane.b32.xlu0 %v1111_v13, %s1177_s25 }
  0xed   :  { %v1113_v16 = vpop.eup %1112 }
  0xee   :  { %v102_v17 = vadd.f32 1.0, %v1113_v16 }
  0xf0   :  { %107 = vrot.lane.b32.xlu0 %v18_v14, %s1178_s28  ;;  %1114 = vrcp.f32 %v102_v17 }
  0xfa   :  { %v1115_v18 = vpop.eup %1114 }
 0x15e   :  { %v113_v19 = vpop.permute.xlu0 %112 }
 0x15f   :  { %v115_v20 = vmul.f32 %v1115_v18, %v113_v19 }
 0x161   :  { %117 = vrot.lane.b32.xlu1 %v115_v20, %s1178_s28 }
 0x162   :  { %v108_v21 = vpop.permute.xlu0 %107 }
 0x163   :  { %v110_v22 = vmul.f32 %v1115_v18, %v108_v21 }
 0x1d3   :  { %v118_v23 = vpop.permute.xlu1 %117 }
 0x1d4   :  { %v120_v24 = vadd.f32 %v118_v23, %v110_v22  ;;  %v913_v23 = vld [vmem:[%s1373_s0 + $0x20] sm:$0xff] }
 0x1d6   :  { %1116 = vtanh.f32 %v120_v24 }
 0x1e0   :  { %v1117_v25 = vpop.eup %1116 }
 0x1e1   :  { %123 = vrot.lane.b32.xlu1 %v1117_v25, %s1177_s25 }
 0x253   :  { %v124_v26 = vpop.permute.xlu1 %123 }
 0x254   :  { %v126_v27 = vmul.f32 %v1115_v18, %v124_v26 }
 0x256   :  { %128 = vrot.lane.b32.xlu0 %v126_v27, %s1178_s28 }
 0x2c8   :  { %v129_v28 = vpop.permute.xlu0 %128 }
 0x2c9   :  { %131 = vst.msk [vmem:[%s1375_s4] sm:$0xff] %vm24_vm1, %v129_v28  ;;  %989 = vmatmul.mubr.msk.f32.vlgmr.msra.gmra.mrb[0].mxu1 %vm24_vm1, %v129_v28 }
 0x2ca   :  { %1077 = vmatpush3.bf16.msra.mxu1 %v1216_v5  ;;  %1010 = vmatprep.mubr.msk.f32.mxu1 %vm1175_vm0, %v1176_v4 }
 0x2cb   :  { %1078 = vmatprep.subr.bf16.mxu1 %v1174_v0 }
 0x2ce   :  { %1080 = vmatpush3.bf16.msra.mxu1 %v1225_v7 }
 0x2cf   :  { %1087 = vmatprep.subr.bf16.mxu1 %v1174_v0 }
 0x39c   :  { %v206_v30 = vpop.f32.mrb[0].mxu1 }
 0x39d   :  { %v210_v31 = vadd.f32 %v901_v29, %v206_v30  ;;  %v990_v32 = vpop.f32.mrb[1].mxu1 }
 0x39f   :  { %1118 = vtanh.f32 %v210_v31  ;;  %v903_v34 = vmul.f32 -1.442695, %v210_v31 }
 0x3a1   :  { %1120 = vpow2.f32 %v903_v34 }
 0x3a9   :  { %v1119_v33 = vpop.eup %1118 }
 0x3aa   :  { %220 = vrot.lane.b32.xlu1 %v1119_v33, %s1177_s25 }
 0x3ab   :  { %v1121_v35 = vpop.eup %1120 }
 0x3ac   :  { %v214_v36 = vadd.f32 1.0, %v1121_v35 }
 0x3ae   :  { %1122 = vrcp.f32 %v214_v36 }
 0x3b8   :  { %v1123_v37 = vpop.eup %1122 }
 0x3b9   :  { %v218_v40 = vmul.f32 %v1123_v37, %v120_v24 }
 0x41c   :  { %v221_v38 = vpop.permute.xlu1 %220 }
 0x41d   :  { %v223_v39 = vmul.f32 %v1123_v37, %v221_v38 }
 0x41f   :  { %225 = vrot.lane.b32.xlu0 %v223_v39, %s1178_s28 }
 0x491   :  { %v226_v41 = vpop.permute.xlu0 %225 }
 0x492   :  { %v228_v42 = vadd.f32 %v226_v41, %v218_v40  ;;  %v917_v41 = vld [vmem:[%s1373_s0 + $0x28] sm:$0xff] }
 0x494   :  { %1124 = vtanh.f32 %v228_v42 }
 0x49e   :  { %v1125_v43 = vpop.eup %1124 }
 0x49f   :  { %231 = vrot.lane.b32.xlu1 %v1125_v43, %s1177_s25 }
 0x511   :  { %v232_v44 = vpop.permute.xlu1 %231 }
 0x512   :  { %v234_v45 = vmul.f32 %v1123_v37, %v232_v44 }
 0x514   :  { %236 = vrot.lane.b32.xlu0 %v234_v45, %s1178_s28 }
 0x586   :  { %v237_v46 = vpop.permute.xlu0 %236 }
 0x587   :  { %904 = vst.msk [vmem:[%s1375_s4 + $0x8] sm:$0xff] %vm24_vm1, %v237_v46  ;;  %1000 = vmatmul.mubr.msk.f32.vlgmr.msra.gmra.mrb[2].mxu0 %vm24_vm1, %v237_v46 }
 0x588   :  { %1083 = vmatpush3.bf16.msra.mxu0 %v1216_v5  ;;  %1021 = vmatprep.mubr.msk.f32.mxu0 %vm1175_vm0, %v1176_v4 }
 0x589   :  { %1084 = vmatprep.subr.bf16.mxu0 %v1174_v0 }
 0x58c   :  { %1086 = vmatpush3.bf16.msra.mxu0 %v1225_v7 }
 0x58d   :  { %1093 = vmatprep.subr.bf16.mxu0 %v1174_v0 }
 0x65a   :  { %v315_v48 = vpop.f32.mrb[2].mxu0 }
 0x65b   :  { %v319_v49 = vadd.f32 %v905_v47, %v315_v48  ;;  %v1001_v50 = vpop.f32.mrb[3].mxu0 }
 0x65d   :  { %1126 = vtanh.f32 %v319_v49  ;;  %v907_v52 = vmul.f32 -1.442695, %v319_v49 }
 0x65f   :  { %1128 = vpow2.f32 %v907_v52 }
 0x667   :  { %v1127_v51 = vpop.eup %1126 }
 0x668   :  { %329 = vrot.lane.b32.xlu1 %v1127_v51, %s1177_s25 }
 0x669   :  { %v1129_v53 = vpop.eup %1128 }
 0x66a   :  { %v323_v54 = vadd.f32 1.0, %v1129_v53 }
 0x66c   :  { %1130 = vrcp.f32 %v323_v54 }
 0x676   :  { %v1131_v55 = vpop.eup %1130 }
 0x677   :  { %v327_v58 = vmul.f32 %v1131_v55, %v228_v42 }
 0x6da   :  { %v330_v56 = vpop.permute.xlu1 %329 }
 0x6db   :  { %v332_v57 = vmul.f32 %v1131_v55, %v330_v56 }
 0x6dd   :  { %334 = vrot.lane.b32.xlu0 %v332_v57, %s1178_s28 }
 0x74f   :  { %v335_v59 = vpop.permute.xlu0 %334 }
 0x750   :  { %v337_v60 = vadd.f32 %v335_v59, %v327_v58 }
 0x752   :  { %1132 = vtanh.f32 %v337_v60 }
 0x75c   :  { %v1133_v61 = vpop.eup %1132 }
 0x75d   :  { %340 = vrot.lane.b32.xlu1 %v1133_v61, %s1177_s25 }
 0x7cf   :  { %v341_v62 = vpop.permute.xlu1 %340 }
 0x7d0   :  { %v343_v63 = vmul.f32 %v1131_v55, %v341_v62  ;;  %v921_v55 = vld [vmem:[%s1373_s0 + $0x30] sm:$0xff] }
 0x7d2   :  { %345 = vrot.lane.b32.xlu0 %v343_v63, %s1178_s28 }
 0x844   :  { %v346_v1 = vpop.permute.xlu0 %345 }
 0x845   :  { %908 = vst.msk [vmem:[%s1375_s4 + $0x10] sm:$0xff] %vm24_vm1, %v346_v1  ;;  %1011 = vmatmul.mubr.msk.f32.vlgmr.msra.gmra.mrb[2].mxu1 %vm24_vm1, %v346_v1 }
 0x846   :  { %1089 = vmatpush3.bf16.msra.mxu1 %v1216_v5  ;;  %1032 = vmatprep.mubr.msk.f32.mxu1 %vm1175_vm0, %v1176_v4 }
 0x847   :  { %1090 = vmatprep.subr.bf16.mxu1 %v1174_v0 }
 0x84a   :  { %1092 = vmatpush3.bf16.msra.mxu1 %v1225_v7 }
 0x84b   :  { %1099 = vmatprep.subr.bf16.mxu1 %v1174_v0 }
 0x918   :  { %v424_v3 = vpop.f32.mrb[2].mxu1 }
 0x919   :  { %v428_v6 = vadd.f32 %v909_v2, %v424_v3  ;;  %v1012_v8 = vpop.f32.mrb[3].mxu1 }
 0x91b   :  { %1134 = vtanh.f32 %v428_v6  ;;  %v911_v10 = vmul.f32 -1.442695, %v428_v6 }
 0x91d   :  { %1136 = vpow2.f32 %v911_v10 }
 0x925   :  { %v1135_v9 = vpop.eup %1134 }
 0x926   :  { %438 = vrot.lane.b32.xlu1 %v1135_v9, %s1177_s25 }
 0x927   :  { %v1137_v11 = vpop.eup %1136 }
 0x928   :  { %v432_v12 = vadd.f32 1.0, %v1137_v11 }
 0x92a   :  { %1138 = vrcp.f32 %v432_v12 }
 0x934   :  { %v1139_v13 = vpop.eup %1138 }
 0x935   :  { %v436_v16 = vmul.f32 %v1139_v13, %v337_v60 }
 0x998   :  { %v439_v14 = vpop.permute.xlu1 %438 }
 0x999   :  { %v441_v15 = vmul.f32 %v1139_v13, %v439_v14 }
 0x99b   :  { %443 = vrot.lane.b32.xlu0 %v441_v15, %s1178_s28 }
 0xa0d   :  { %v444_v17 = vpop.permute.xlu0 %443 }
 0xa0e   :  { %v446_v18 = vadd.f32 %v444_v17, %v436_v16 }
 0xa10   :  { %1140 = vtanh.f32 %v446_v18 }
 0xa1a   :  { %v1141_v19 = vpop.eup %1140 }
 0xa1b   :  { %449 = vrot.lane.b32.xlu1 %v1141_v19, %s1177_s25 }
 0xa8d   :  { %v450_v20 = vpop.permute.xlu1 %449 }
 0xa8e   :  { %v452_v21 = vmul.f32 %v1139_v13, %v450_v20  ;;  %v925_v13 = vld [vmem:[%s1373_s0 + $0x38] sm:$0xff] }
 0xa90   :  { %454 = vrot.lane.b32.xlu0 %v452_v21, %s1178_s28 }
 0xb02   :  { %v455_v22 = vpop.permute.xlu0 %454 }
 0xb03   :  { %912 = vst.msk [vmem:[%s1375_s4 + $0x18] sm:$0xff] %vm24_vm1, %v455_v22  ;;  %1022 = vmatmul.mubr.msk.f32.vlgmr.msra.gmra.mrb[4].mxu0 %vm24_vm1, %v455_v22 }
 0xb04   :  { %1095 = vmatpush3.bf16.msra.mxu0 %v1216_v5  ;;  %1043 = vmatprep.mubr.msk.f32.mxu0 %vm1175_vm0, %v1176_v4 }
 0xb05   :  { %1096 = vmatprep.subr.bf16.mxu0 %v1174_v0 }
 0xb08   :  { %1098 = vmatpush3.bf16.msra.mxu0 %v1225_v7 }
 0xbd6   :  { %v533_v24 = vpop.f32.mrb[4].mxu0 }
 0xbd7   :  { %v537_v25 = vadd.f32 %v913_v23, %v533_v24  ;;  %v1023_v26 = vpop.f32.mrb[5].mxu0 }
 0xbd9   :  { %1142 = vtanh.f32 %v537_v25  ;;  %v915_v28 = vmul.f32 -1.442695, %v537_v25 }
 0xbdb   :  { %1144 = vpow2.f32 %v915_v28 }
 0xbe3   :  { %v1143_v27 = vpop.eup %1142 }
 0xbe4   :  { %547 = vrot.lane.b32.xlu1 %v1143_v27, %s1177_s25 }
 0xbe5   :  { %v1145_v29 = vpop.eup %1144 }
 0xbe6   :  { %v541_v30 = vadd.f32 1.0, %v1145_v29 }
 0xbe8   :  { %1146 = vrcp.f32 %v541_v30 }
 0xbf2   :  { %v1147_v31 = vpop.eup %1146 }
 0xbf3   :  { %v545_v34 = vmul.f32 %v1147_v31, %v446_v18 }
 0xc56   :  { %v548_v32 = vpop.permute.xlu1 %547 }
 0xc57   :  { %v550_v33 = vmul.f32 %v1147_v31, %v548_v32 }
 0xc59   :  { %552 = vrot.lane.b32.xlu0 %v550_v33, %s1178_s28 }
 0xccb   :  { %v553_v35 = vpop.permute.xlu0 %552 }
 0xccc   :  { %v555_v36 = vadd.f32 %v553_v35, %v545_v34 }
 0xcce   :  { %1148 = vtanh.f32 %v555_v36 }
 0xcd8   :  { %v1149_v37 = vpop.eup %1148 }
 0xcd9   :  { %558 = vrot.lane.b32.xlu1 %v1149_v37, %s1177_s25 }
 0xd4b   :  { %v559_v38 = vpop.permute.xlu1 %558 }
 0xd4c   :  { %v561_v39 = vmul.f32 %v1147_v31, %v559_v38 }
 0xd4e   :  { %563 = vrot.lane.b32.xlu0 %v561_v39, %s1178_s28 }
 0xdc0   :  { %v564_v40 = vpop.permute.xlu0 %563 }
 0xdc1   :  { %916 = vst.msk [vmem:[%s1375_s4 + $0x20] sm:$0xff] %vm24_vm1, %v564_v40  ;;  %1033 = vmatmul.mubr.msk.f32.vlgmr.msra.gmra.mrb[4].mxu1 %vm24_vm1, %v564_v40 }
 0xdc2   :  { %1101 = vmatpush3.bf16.msra.mxu1 %v1216_v5  ;;  %1054 = vmatprep.mubr.msk.f32.mxu1 %vm1175_vm0, %v1176_v4 }
 0xdc3   :  { %1102 = vmatprep.subr.bf16.mxu1 %v1174_v0 }
 0xdc6   :  { %1104 = vmatpush3.bf16.msra.mxu1 %v1225_v7 }
 0xe94   :  { %v642_v42 = vpop.f32.mrb[4].mxu1 }
 0xe95   :  { %v646_v43 = vadd.f32 %v917_v41, %v642_v42  ;;  %v1034_v44 = vpop.f32.mrb[5].mxu1 }
 0xe97   :  { %1150 = vtanh.f32 %v646_v43  ;;  %v919_v46 = vmul.f32 -1.442695, %v646_v43 }
 0xe99   :  { %1152 = vpow2.f32 %v919_v46 }
 0xea1   :  { %v1151_v45 = vpop.eup %1150 }
 0xea2   :  { %656 = vrot.lane.b32.xlu1 %v1151_v45, %s1177_s25 }
 0xea3   :  { %v1153_v5 = vpop.eup %1152 }
 0xea4   :  { %v650_v47 = vadd.f32 1.0, %v1153_v5 }
 0xea6   :  { %1154 = vrcp.f32 %v650_v47 }
 0xeb0   :  { %v1155_v4 = vpop.eup %1154 }
 0xeb1   :  { %v654_v7 = vmul.f32 %v1155_v4, %v555_v36 }
 0xf14   :  { %v657_v0 = vpop.permute.xlu1 %656 }
 0xf15   :  { %v659_v48 = vmul.f32 %v1155_v4, %v657_v0 }
 0xf17   :  { %661 = vrot.lane.b32.xlu0 %v659_v48, %s1178_s28 }
 0xf89   :  { %v662_v49 = vpop.permute.xlu0 %661 }
 0xf8a   :  { %v664_v50 = vadd.f32 %v662_v49, %v654_v7 }
 0xf8c   :  { %1156 = vtanh.f32 %v664_v50 }
 0xf96   :  { %v1157_v51 = vpop.eup %1156 }
 0xf97   :  { %667 = vrot.lane.b32.xlu1 %v1157_v51, %s1177_s25 }
0x1009   :  { %v668_v52 = vpop.permute.xlu1 %667 }
0x100a   :  { %v670_v53 = vmul.f32 %v1155_v4, %v668_v52 }
0x100c   :  { %672 = vrot.lane.b32.xlu0 %v670_v53, %s1178_s28 }
0x107e   :  { %v673_v54 = vpop.permute.xlu0 %672 }
0x107f   :  { %920 = vst.msk [vmem:[%s1375_s4 + $0x28] sm:$0xff] %vm24_vm1, %v673_v54  ;;  %1044 = vmatmul.mubr.msk.f32.vlgmr.msra.gmra.mrb[6].mxu0 %vm24_vm1, %v673_v54 }
0x1152   :  { %v751_v56 = vpop.f32.mrb[6].mxu0 }
0x1153   :  { %v755_v57 = vadd.f32 %v921_v55, %v751_v56  ;;  %v1045_v58 = vpop.f32.mrb[7].mxu0 }
0x1155   :  { %1158 = vtanh.f32 %v755_v57  ;;  %v923_v60 = vmul.f32 -1.442695, %v755_v57 }
0x1157   :  { %1160 = vpow2.f32 %v923_v60 }
0x115f   :  { %v1159_v59 = vpop.eup %1158 }
0x1160   :  { %765 = vrot.lane.b32.xlu1 %v1159_v59, %s1177_s25 }
0x1161   :  { %v1161_v61 = vpop.eup %1160 }
0x1162   :  { %v759_v62 = vadd.f32 1.0, %v1161_v61 }
0x1164   :  { %1162 = vrcp.f32 %v759_v62 }
0x116e   :  { %v1163_v63 = vpop.eup %1162 }
0x116f   :  { %v763_v3 = vmul.f32 %v1163_v63, %v664_v50 }
0x11d2   :  { %v766_v1 = vpop.permute.xlu1 %765 }
0x11d3   :  { %v768_v2 = vmul.f32 %v1163_v63, %v766_v1 }
0x11d5   :  { %770 = vrot.lane.b32.xlu0 %v768_v2, %s1178_s28 }
0x1247   :  { %v771_v6 = vpop.permute.xlu0 %770 }
0x1248   :  { %v773_v8 = vadd.f32 %v771_v6, %v763_v3 }
0x124a   :  { %1164 = vtanh.f32 %v773_v8 }
0x1254   :  { %v1165_v9 = vpop.eup %1164 }
0x1255   :  { %776 = vrot.lane.b32.xlu1 %v1165_v9, %s1177_s25 }
0x12c7   :  { %v777_v10 = vpop.permute.xlu1 %776 }
0x12c8   :  { %v779_v11 = vmul.f32 %v1163_v63, %v777_v10 }
0x12ca   :  { %781 = vrot.lane.b32.xlu0 %v779_v11, %s1178_s28 }
0x133c   :  { %v782_v12 = vpop.permute.xlu0 %781 }
0x133d   :  { %924 = vst.msk [vmem:[%s1375_s4 + $0x30] sm:$0xff] %vm24_vm1, %v782_v12  ;;  %1055 = vmatmul.mubr.msk.f32.vlgmr.msra.gmra.mrb[6].mxu1 %vm24_vm1, %v782_v12 }
0x1410   :  { %v860_v14 = vpop.f32.mrb[6].mxu1 }
0x1411   :  { %v864_v15 = vadd.f32 %v925_v13, %v860_v14  ;;  %v1056_v16 = vpop.f32.mrb[7].mxu1 }
0x1413   :  { %1166 = vtanh.f32 %v864_v15  ;;  %v927_v18 = vmul.f32 -1.442695, %v864_v15 }
0x1415   :  { %1168 = vpow2.f32 %v927_v18 }
0x141d   :  { %v1167_v17 = vpop.eup %1166 }
0x141e   :  { %874 = vrot.lane.b32.xlu1 %v1167_v17, %s1177_s25 }
0x141f   :  { %v1169_v19 = vpop.eup %1168 }
0x1420   :  { %v868_v20 = vadd.f32 1.0, %v1169_v19 }
0x1422   :  { %1170 = vrcp.f32 %v868_v20 }
0x142c   :  { %v1171_v21 = vpop.eup %1170 }
0x142d   :  { %v872_v24 = vmul.f32 %v1171_v21, %v773_v8 }
0x1490   :  { %v875_v22 = vpop.permute.xlu1 %874 }
0x1491   :  { %v877_v23 = vmul.f32 %v1171_v21, %v875_v22 }
0x1493   :  { %879 = vrot.lane.b32.xlu0 %v877_v23, %s1178_s28 }
0x1505   :  { %v880_v25 = vpop.permute.xlu0 %879 }
0x1506   :  { %v882_v26 = vadd.f32 %v880_v25, %v872_v24 }
0x1508   :  { %1172 = vtanh.f32 %v882_v26 }
0x1512   :  { %v1173_v27 = vpop.eup %1172 }
0x1513   :  { %885 = vrot.lane.b32.xlu1 %v1173_v27, %s1177_s25 }
0x1585   :  { %v886_v28 = vpop.permute.xlu1 %885 }
0x1586   :  { %v888_v29 = vmul.f32 %v1171_v21, %v886_v28 }
0x1588   :  { %890 = vrot.lane.b32.xlu0 %v888_v29, %s1178_s28 }
0x15fa   :  { %v891_v30 = vpop.permute.xlu0 %890 }
0x15fb   :  { %928 = vst.msk [vmem:[%s1375_s4 + $0x38] sm:$0xff] %vm24_vm1, %v891_v30 }

</bundles_post_ra>
